<compile_context>
chip_gen: v5e
topology: v5e:2x2
jax: 0.10.0
libtpu: 0.0.40
codegen_flags: <defaults>
</compile_context>

<pallas_src>
import functools
import math

import jax
import jax.numpy as jnp
from jax.experimental import pallas as pl
from jax.experimental.pallas import tpu as pltpu


# ----------------------------- helpers -----------------------------

def _round_up(x, m):
    return ((x + m - 1) // m) * m


def _vmem_limit_bytes():
    """Scoped-VMEM budget derived from the chip: v5e/v6e (128 MiB phys) -> 96 MiB,
    v7x (64 MiB phys) -> 48 MiB.  Falls back to a safe value if the query is unavailable."""
    try:
        cap = int(pltpu.get_tpu_info().vmem_capacity_bytes)
    except Exception:
        cap = 128 * 1024 * 1024
    if cap <= 0:
        cap = 128 * 1024 * 1024
    return int(max(32 * 1024 * 1024, min(96 * 1024 * 1024, (cap * 3) // 4)))


_SINGLE_BUF_OK = None


def _single_buffer_supported():
    """Probe (once) whether pipeline_mode=pl.Buffered(1) lowers AND reuses the constant-index
    block correctly on this backend.  Used only for grid-invariant weights."""
    global _SINGLE_BUF_OK
    if _SINGLE_BUF_OK is not None:
        return _SINGLE_BUF_OK
    try:
        def _probe(x_ref, o_ref):
            o_ref[...] = x_ref[...] + 1.0

        x = jnp.arange(16 * 128, dtype=jnp.float32).reshape(16, 128)
        fn = pl.pallas_call(
            _probe,
            out_shape=jax.ShapeDtypeStruct((16, 128), jnp.float32),
            grid=(2,),
            in_specs=[pl.BlockSpec((8, 128), lambda i: (0, 0),
                                   pipeline_mode=pl.Buffered(1))],
            out_specs=pl.BlockSpec((8, 128), lambda i: (i, 0)),
        )
        y = jax.block_until_ready(fn(x))
        expect = jnp.tile(x[:8] + 1.0, (2, 1))
        _SINGLE_BUF_OK = bool(jnp.allclose(y, expect))
    except Exception:
        _SINGLE_BUF_OK = False
    return _SINGLE_BUF_OK


def _pick_token_tile(n, preferred, min_steps=2):
    """Largest multiple-of-8 divisor of n that is <= preferred and (when possible) leaves at
    least `min_steps` grid steps, so the 'parallel' axis can be sharded across 2 TCs (v7x)."""
    cap = min(preferred, n)
    if n >= 2 * 8 and n // cap < min_steps:
        cap = max(8, ((n // min_steps) // 8) * 8)
    t = (cap // 8) * 8
    while t >= 8:
        if n % t == 0:
            return t
        t -= 8
    return n


def _attn_tiles(hw):
    """Pick the attention q/kv tile (multiple of 8, <= 512) and the padded token count it divides.
    Padded KV tokens are masked in-kernel; padded Q rows are discarded by the wrapper."""
    if hw <= 512:
        t = _round_up(hw, 8)
        return t, t
    best_t, best_pad = None, None
    for t in (512, 256, 128):
        padded = _round_up(hw, t)
        if best_pad is None or padded < best_pad:
            best_t, best_pad = t, padded
    return best_t, best_pad


# ----------------------------- kernel 1: fused conv + fused Q/K/V projection -----------------------------

def _conv_qkv_kernel(xs_ref, cw_ref, cb_ref, wqkv_ref, bqkv_ref, q_ref, k_ref, v_ref):
    # One big matmul over the fused (9*C, padded) contraction dim replaces the 9-tap accumulate loop.
    y = jnp.dot(xs_ref[...], cw_ref[...], preferred_element_type=jnp.float32)
    y = y + cb_ref[...]                                   # (TT, Cp) f32
    yb = y.astype(jnp.bfloat16)

    # Single fused QKV matmul: (TT, Cp) @ (Cp, 3*Cp).  1/sqrt(d_k) already folded into the q slice.
    qkv = jnp.dot(yb, wqkv_ref[...], preferred_element_type=jnp.float32) + bqkv_ref[...]
    cp = q_ref.shape[-1]
    q_ref[...] = qkv[:, :cp].astype(q_ref.dtype)
    k_ref[...] = qkv[:, cp:2 * cp].astype(k_ref.dtype)
    v_ref[...] = qkv[:, 2 * cp:].astype(v_ref.dtype)


# ----------------------------- kernel 2: flash attention + out-proj + residual -----------------------------

def _flash_attn_out_kernel(q_ref, k_ref, v_ref, wo_ref, bo_ref, xres_ref, o_ref,
                           m_sc, l_sc, acc_sc, *, hw_valid, tk, need_mask):
    kv = pl.program_id(2)

    @pl.when(kv == 0)
    def _():
        m_sc[...] = jnp.full(m_sc.shape, -jnp.inf, m_sc.dtype)
        l_sc[...] = jnp.zeros(l_sc.shape, l_sc.dtype)
        acc_sc[...] = jnp.zeros(acc_sc.shape, acc_sc.dtype)

    # scores: (TQ, Cp) x (TK, Cp) contracted on d -> (TQ, TK); bf16 in, f32 acc; no explicit k.T.
    s = jax.lax.dot_general(q_ref[...], k_ref[...],
                            dimension_numbers=(((1,), (1,)), ((), ())),
                            preferred_element_type=jnp.float32)
    if need_mask:
        # Padded KV tokens (index >= hw_valid) must not contribute to the softmax denominator.
        col = jax.lax.broadcasted_iota(jnp.int32, s.shape, 1) + kv * tk
        s = jnp.where(col < hw_valid, s, -jnp.inf)

    m_new = jnp.maximum(m_sc[...], s.max(axis=-1, keepdims=True))
    alpha = jnp.exp(m_sc[...] - m_new)
    p = jnp.exp(s - m_new)                                # unnormalized probabilities (f32)
    l_sc[...] = alpha * l_sc[...] + p.sum(axis=-1, keepdims=True)
    acc_sc[...] = alpha * acc_sc[...] + jnp.dot(
        p.astype(jnp.bfloat16), v_ref[...], preferred_element_type=jnp.float32)
    m_sc[...] = m_new

    @pl.when(kv == pl.num_programs(2) - 1)
    def _():
        # normalize AFTER p@v: one EUP reciprocal + O(TQ*Cp) multiply instead of O(TQ*HW) divides.
        ctx = acc_sc[...] * pl.reciprocal(l_sc[...], approx=True)        # (TQ, Cp) f32
        out = jnp.dot(ctx.astype(jnp.bfloat16), wo_ref[...],
                      preferred_element_type=jnp.float32) + bo_ref[...]
        o_ref[...] = (xres_ref[...] + out).astype(o_ref.dtype)           # residual: x + attn(conv(x))


# ----------------------------- wrapper -----------------------------

def position_attention_module(x_nchw, params, kernel_size=3):
    B, C, H, W = x_nchw.shape
    K = kernel_size
    pad = K // 2
    HW = H * W
    n_taps = K * K
    Cp = _round_up(C, 128)                 # lane-dense channel dim (output side)
    Kc = _round_up(n_taps * C, 128)        # conv contraction dim: taps at TRUE C, padded once
    dC = Cp - C
    scale = 1.0 / math.sqrt(C)             # d_k = in_channels in the PyTorch module

    TQ, HW_pad = _attn_tiles(HW)
    TK = TQ
    need_mask = HW_pad != HW
    N = B * HW_pad

    vmem_cap = _vmem_limit_bytes()
    single_buf = _single_buffer_supported()

    def _wspec(shape, imap):
        # grid-invariant weights/biases: single-buffer when supported (pure VMEM saving).
        if single_buf:
            return pl.BlockSpec(shape, imap, pipeline_mode=pl.Buffered(1))
        return pl.BlockSpec(shape, imap)

    # ---- glue (pure JAX): NCHW -> NHWC, im2col at true C, pad tokens + contraction dim once ----
    x_nhwc = jnp.transpose(x_nchw, (0, 2, 3, 1))
    xsp = jnp.pad(x_nhwc, ((0, 0), (pad, pad), (pad, pad), (0, 0)))
    taps = [xsp[:, dy:dy + H, dx:dx + W, :] for dy in range(K) for dx in range(K)]
    xs = jnp.concatenate(taps, axis=-1).reshape(B, HW, n_taps * C)
    xs = jnp.pad(xs, ((0, 0), (0, HW_pad - HW), (0, Kc - n_taps * C)))
    xs = xs.reshape(N, Kc).astype(jnp.bfloat16)

    # residual tokens kept f32 (dominant output term), padded to the same token/channel layout.
    x_tok = jnp.pad(x_nhwc.reshape(B, HW, C), ((0, 0), (0, HW_pad - HW), (0, dC)))

    # ---- padded / fused / bf16 params ----
    cw = params["conv_w"].reshape(n_taps * C, C)
    cw = jnp.pad(cw, ((0, Kc - n_taps * C), (0, dC))).astype(jnp.bfloat16)
    cb = jnp.pad(params["conv_b"], ((0, 0), (0, dC)))                      # f32

    def _pw(w):
        return jnp.pad(w, ((0, dC), (0, dC)))

    def _pb(b):
        return jnp.pad(b, ((0, 0), (0, dC)))

    # fused QKV weight (Cp, 3*Cp); 1/sqrt(d_k) folded into the q slice (weight + bias).
    wqkv = jnp.concatenate([_pw(params["wq"] * scale), _pw(params["wk"]), _pw(params["wv"])],
                           axis=1).astype(jnp.bfloat16)
    bqkv = jnp.concatenate([_pb(params["bq"] * scale), _pb(params["bk"]), _pb(params["bv"])],
                           axis=1)                                         # f32
    wo = _pw(params["wo"]).astype(jnp.bfloat16)
    bo = _pb(params["bo"])                                                 # f32

    # ---- kernel-1 token tile: scale preference with the VMEM budget, keep >=2 parallel steps ----
    tt_pref = 1024 if vmem_cap >= 64 * 1024 * 1024 else 512
    TT = _pick_token_tile(N, tt_pref)

    # ---- kernel 1: conv(3x3) + fused Q/K/V projection over all B*HW_pad tokens ----
    q, k, v = pl.pallas_call(
        _conv_qkv_kernel,
        out_shape=(jax.ShapeDtypeStruct((N, Cp), jnp.bfloat16),) * 3,
        grid_spec=pltpu.PrefetchScalarGridSpec(
            num_scalar_prefetch=0,
            grid=(N // TT,),
            in_specs=[
                pl.BlockSpec((TT, Kc), lambda i: (i, 0)),      # fused im2col tokens
                _wspec((Kc, Cp), lambda i: (0, 0)),            # fused conv weight
                _wspec((1, Cp), lambda i: (0, 0)),             # conv bias
                _wspec((Cp, 3 * Cp), lambda i: (0, 0)),        # fused QKV weight
                _wspec((1, 3 * Cp), lambda i: (0, 0)),         # fused QKV bias
            ],
            out_specs=(pl.BlockSpec((TT, Cp), lambda i: (i, 0)),) * 3,
        ),
        compiler_params=pltpu.CompilerParams(
            dimension_semantics=("parallel",),
            vmem_limit_bytes=vmem_cap),
    )(xs, cw, cb, wqkv, bqkv)

    q3 = q.reshape(B, HW_pad, Cp)
    k3 = k.reshape(B, HW_pad, Cp)
    v3 = v.reshape(B, HW_pad, Cp)

    # ---- kernel 2: flash-style attention + output projection + residual ----
    out_tok = pl.pallas_call(
        functools.partial(_flash_attn_out_kernel, hw_valid=HW, tk=TK, need_mask=need_mask),
        out_shape=jax.ShapeDtypeStruct((B, HW_pad, Cp), x_nchw.dtype),
        grid_spec=pltpu.PrefetchScalarGridSpec(
            num_scalar_prefetch=0,
            grid=(B, HW_pad // TQ, HW_pad // TK),
            in_specs=[
                pl.BlockSpec((None, TQ, Cp), lambda b, qi, kv: (b, qi, 0)),   # q (pre-scaled)
                pl.BlockSpec((None, TK, Cp), lambda b, qi, kv: (b, kv, 0)),   # k
                pl.BlockSpec((None, TK, Cp), lambda b, qi, kv: (b, kv, 0)),   # v
                _wspec((Cp, Cp), lambda b, qi, kv: (0, 0)),                   # wo
                _wspec((1, Cp), lambda b, qi, kv: (0, 0)),                    # bo
                pl.BlockSpec((None, TQ, Cp), lambda b, qi, kv: (b, qi, 0)),   # residual x tokens
            ],
            out_specs=pl.BlockSpec((None, TQ, Cp), lambda b, qi, kv: (b, qi, 0)),
            scratch_shapes=[
                pltpu.VMEM((TQ, 1), jnp.float32),    # running max
                pltpu.VMEM((TQ, 1), jnp.float32),    # running sum
                pltpu.VMEM((TQ, Cp), jnp.float32),   # output accumulator
            ],
        ),
        compiler_params=pltpu.CompilerParams(
            dimension_semantics=("parallel", "parallel", "arbitrary"),
            vmem_limit_bytes=vmem_cap),
    )(q3, k3, v3, wo, bo, x_tok)

    # glue: tokens -> drop token/channel padding -> NHWC -> NCHW
    out = out_tok[:, :HW, :C].reshape(B, H, W, C)
    return jnp.transpose(out, (0, 3, 1, 2))


# ----------------------------- params & reference -----------------------------

def init_params(key, C, kernel_size=3):
    K = kernel_size
    ks = jax.random.split(key, 10)
    s = 0.05
    return {
        # conv weight stored as (K*K, Cin, Cout); tap t = dy*K + dx
        "conv_w": s * jax.random.normal(ks[0], (K * K, C, C), jnp.float32),
        "conv_b": s * jax.random.normal(ks[1], (1, C), jnp.float32),
        # linear weights stored (in, out); biases (1, out)
        "wq": s * jax.random.normal(ks[2], (C, C), jnp.float32),
        "bq": s * jax.random.normal(ks[3], (1, C), jnp.float32),
        "wk": s * jax.random.normal(ks[4], (C, C), jnp.float32),
        "bk": s * jax.random.normal(ks[5], (1, C), jnp.float32),
        "wv": s * jax.random.normal(ks[6], (C, C), jnp.float32),
        "bv": s * jax.random.normal(ks[7], (1, C), jnp.float32),
        "wo": s * jax.random.normal(ks[8], (C, C), jnp.float32),
        "bo": s * jax.random.normal(ks[9], (1, C), jnp.float32),
    }


def reference(x_nchw, params, kernel_size=3):
    """Pure-JAX f32 reference of the PyTorch forward (eval mode)."""
    B, C, H, W = x_nchw.shape
    K = kernel_size
    x_nhwc = jnp.transpose(x_nchw, (0, 2, 3, 1))
    w_hwio = params["conv_w"].reshape(K, K, C, C)
    y = jax.lax.conv_general_dilated(
        x_nhwc, w_hwio, window_strides=(1, 1), padding="SAME",
        dimension_numbers=("NHWC", "HWIO", "NHWC"))
    y = y + params["conv_b"][0]
    y = y.reshape(B, H * W, C)
    q = y @ params["wq"] + params["bq"]
    k = y @ params["wk"] + params["bk"]
    v = y @ params["wv"] + params["bv"]
    att = jax.nn.softmax((q @ jnp.swapaxes(k, -1, -2)) / math.sqrt(C), axis=-1)
    out = att @ v
    out = out @ params["wo"] + params["bo"]
    out = jnp.transpose(out.reshape(B, H, W, C), (0, 3, 1, 2))
    return x_nchw + out


if __name__ == "__main__":
    B, C, H, W = 2, 32, 16, 16        # small shapes; n_heads=1, d_k=d_v=C as in the module
    key = jax.random.PRNGKey(0)
    kx, kp = jax.random.split(key)
    x = jax.random.normal(kx, (B, C, H, W), jnp.float32)   # NCHW like the PyTorch module
    params = init_params(kp, C)

    out = jax.block_until_ready(position_attention_module(x, params))
    ref = jax.block_until_ready(reference(x, params))

    assert out.shape == (B, C, H, W)
    # bf16 MXU operands (f32 accumulation) + approx reciprocal -> compare at bf16-level tolerance.
    assert jnp.allclose(out, ref, rtol=2e-2, atol=2e-2), float(jnp.max(jnp.abs(out - ref)))
    print("KERNEL_OK")
</pallas_src>

<mosaic_0001>
module attributes {stable_mosaic.version = 11 : i64} {
  func.func @_probe(%arg0: i32, %arg1: memref<8x128xf32, #tpu.memory_space<vmem>>, %arg2: memref<8x128xf32, #tpu.memory_space<vmem>>) attributes {dimension_semantics = [#tpu.dimension_semantics<arbitrary>], iteration_bounds = array<i64: 2>, scalar_prefetch = 0 : i64, scratch_operands = 0 : i64, tpu.core_type = #tpu.core_type<tc>, window_params = [{pipeline_mode = #tpu.pipeline_mode<synchronous>, transform_indices = @transform_0, window_bounds = array<i64: 8, 128>}, {transform_indices = @transform_1, window_bounds = array<i64: 8, 128>}]} {
    %c0 = arith.constant 0 : index
    %c0_0 = arith.constant 0 : index
    %0 = vector.load %arg1[%c0, %c0_0] : memref<8x128xf32, #tpu.memory_space<vmem>>, vector<8x128xf32>
    %cst = arith.constant 1.000000e+00 : f32
    %1 = vector.broadcast %cst : f32 to vector<8x128xf32>
    %2 = arith.addf %0, %1 : vector<8x128xf32>
    %c0_1 = arith.constant 0 : index
    %c0_2 = arith.constant 0 : index
    %3 = vector.load %arg2[%c0_1, %c0_2] : memref<8x128xf32, #tpu.memory_space<vmem>>, vector<8x128xf32>
    tpu.vector_store %arg2[%c0_1, %c0_2], %2 {strides = array<i32>} : memref<8x128xf32, #tpu.memory_space<vmem>>, vector<8x128xf32>,
    return
  }
  func.func @transform_0(%arg0: i32) -> (i32, i32) {
    %c0_i32 = arith.constant 0 : i32
    %c0_i32_0 = arith.constant 0 : i32
    %c0_i32_1 = arith.constant 0 : i32
    return %c0_i32, %c0_i32_0 : i32, i32
  }
  func.func @transform_1(%arg0: i32) -> (i32, i32) {
    %c0_i32 = arith.constant 0 : i32
    %c0_i32_0 = arith.constant 0 : i32
    return %arg0, %c0_i32 : i32, i32
  }
}

module attributes {stable_mosaic.version = 11 : i64} {
  func.func @_conv_qkv_kernel(%arg0: i32, %arg1: memref<256x384xbf16, #tpu.memory_space<vmem>>, %arg2: memref<384x128xbf16, #tpu.memory_space<vmem>>, %arg3: memref<1x128xf32, #tpu.memory_space<vmem>>, %arg4: memref<128x384xbf16, #tpu.memory_space<vmem>>, %arg5: memref<1x384xf32, #tpu.memory_space<vmem>>, %arg6: memref<256x128xbf16, #tpu.memory_space<vmem>>, %arg7: memref<256x128xbf16, #tpu.memory_space<vmem>>, %arg8: memref<256x128xbf16, #tpu.memory_space<vmem>>) attributes {dimension_semantics = [#tpu.dimension_semantics<parallel>], iteration_bounds = array<i64: 2>, scalar_prefetch = 0 : i64, scratch_operands = 0 : i64, tpu.core_type = #tpu.core_type<tc>, window_params = [{transform_indices = @transform_0, window_bounds = array<i64: 256, 384>}, {pipeline_mode = #tpu.pipeline_mode<synchronous>, transform_indices = @transform_1, window_bounds = array<i64: 384, 128>}, {pipeline_mode = #tpu.pipeline_mode<synchronous>, transform_indices = @transform_2, window_bounds = array<i64: 1, 128>}, {pipeline_mode = #tpu.pipeline_mode<synchronous>, transform_indices = @transform_3, window_bounds = array<i64: 128, 384>}, {pipeline_mode = #tpu.pipeline_mode<synchronous>, transform_indices = @transform_4, window_bounds = array<i64: 1, 384>}, {transform_indices = @transform_5, window_bounds = array<i64: 256, 128>}, {transform_indices = @transform_6, window_bounds = array<i64: 256, 128>}, {transform_indices = @transform_7, window_bounds = array<i64: 256, 128>}]} {
    %c0 = arith.constant 0 : index
    %c0_0 = arith.constant 0 : index
    %0 = vector.load %arg1[%c0, %c0_0] : memref<256x384xbf16, #tpu.memory_space<vmem>>, vector<256x384xbf16>
    %c0_1 = arith.constant 0 : index
    %c0_2 = arith.constant 0 : index
    %1 = vector.load %arg2[%c0_1, %c0_2] : memref<384x128xbf16, #tpu.memory_space<vmem>>, vector<384x128xbf16>
    %cst = arith.constant dense<0.000000e+00> : vector<256x128xf32>
    %2 = tpu.matmul %0, %1, %cst {dimension_numbers = #tpu.dot_dimension_numbers<[1], [0], [0], [1], [0, 0, 1, 1], [], []>} : vector<256x384xbf16>, vector<384x128xbf16>, vector<256x128xf32> -> vector<256x128xf32>
    %c0_3 = arith.constant 0 : index
    %c0_4 = arith.constant 0 : index
    %3 = vector.load %arg3[%c0_3, %c0_4] : memref<1x128xf32, #tpu.memory_space<vmem>>, vector<1x128xf32>
    %4 = vector.broadcast %3 : vector<1x128xf32> to vector<256x128xf32>
    %5 = arith.addf %2, %4 : vector<256x128xf32>
    %6 = arith.truncf %5 : vector<256x128xf32> to vector<256x128xbf16>
    %c0_5 = arith.constant 0 : index
    %c0_6 = arith.constant 0 : index
    %7 = vector.load %arg4[%c0_5, %c0_6] : memref<128x384xbf16, #tpu.memory_space<vmem>>, vector<128x384xbf16>
    %cst_7 = arith.constant dense<0.000000e+00> : vector<256x384xf32>
    %8 = tpu.matmul %6, %7, %cst_7 {dimension_numbers = #tpu.dot_dimension_numbers<[1], [0], [0], [1], [0, 0, 1, 1], [], []>} : vector<256x128xbf16>, vector<128x384xbf16>, vector<256x384xf32> -> vector<256x384xf32>
    %c0_8 = arith.constant 0 : index
    %c0_9 = arith.constant 0 : index
    %9 = vector.load %arg5[%c0_8, %c0_9] : memref<1x384xf32, #tpu.memory_space<vmem>>, vector<1x384xf32>
    %10 = vector.broadcast %9 : vector<1x384xf32> to vector<256x384xf32>
    %11 = arith.addf %8, %10 : vector<256x384xf32>
    %12 = vector.extract_strided_slice %11 {offsets = [0, 0], sizes = [256, 128], strides = [1, 1]} : vector<256x384xf32> to vector<256x128xf32>
    %13 = arith.truncf %12 : vector<256x128xf32> to vector<256x128xbf16>
    %c0_10 = arith.constant 0 : index
    %c0_11 = arith.constant 0 : index
    %14 = vector.load %arg6[%c0_10, %c0_11] : memref<256x128xbf16, #tpu.memory_space<vmem>>, vector<256x128xbf16>
    tpu.vector_store %arg6[%c0_10, %c0_11], %13 {strides = array<i32>} : memref<256x128xbf16, #tpu.memory_space<vmem>>, vector<256x128xbf16>,
    %15 = vector.extract_strided_slice %11 {offsets = [0, 128], sizes = [256, 128], strides = [1, 1]} : vector<256x384xf32> to vector<256x128xf32>
    %16 = arith.truncf %15 : vector<256x128xf32> to vector<256x128xbf16>
    %c0_12 = arith.constant 0 : index
    %c0_13 = arith.constant 0 : index
    %17 = vector.load %arg7[%c0_12, %c0_13] : memref<256x128xbf16, #tpu.memory_space<vmem>>, vector<256x128xbf16>
    tpu.vector_store %arg7[%c0_12, %c0_13], %16 {strides = array<i32>} : memref<256x128xbf16, #tpu.memory_space<vmem>>, vector<256x128xbf16>,
    %18 = vector.extract_strided_slice %11 {offsets = [0, 256], sizes = [256, 128], strides = [1, 1]} : vector<256x384xf32> to vector<256x128xf32>
    %19 = arith.truncf %18 : vector<256x128xf32> to vector<256x128xbf16>
    %c0_14 = arith.constant 0 : index
    %c0_15 = arith.constant 0 : index
    %20 = vector.load %arg8[%c0_14, %c0_15] : memref<256x128xbf16, #tpu.memory_space<vmem>>, vector<256x128xbf16>
    tpu.vector_store %arg8[%c0_14, %c0_15], %19 {strides = array<i32>} : memref<256x128xbf16, #tpu.memory_space<vmem>>, vector<256x128xbf16>,
    return
  }
  func.func @transform_0(%arg0: i32) -> (i32, i32) {
    %c0_i32 = arith.constant 0 : i32
    %c0_i32_0 = arith.constant 0 : i32
    return %arg0, %c0_i32 : i32, i32
  }
  func.func @transform_1(%arg0: i32) -> (i32, i32) {
    %c0_i32 = arith.constant 0 : i32
    %c0_i32_0 = arith.constant 0 : i32
    %c0_i32_1 = arith.constant 0 : i32
    return %c0_i32, %c0_i32_0 : i32, i32
  }
  func.func @transform_2(%arg0: i32) -> (i32, i32) {
    %c0_i32 = arith.constant 0 : i32
    %c0_i32_0 = arith.constant 0 : i32
    %c0_i32_1 = arith.constant 0 : i32
    return %c0_i32, %c0_i32_0 : i32, i32
  }
  func.func @transform_3(%arg0: i32) -> (i32, i32) {
    %c0_i32 = arith.constant 0 : i32
    %c0_i32_0 = arith.constant 0 : i32
    %c0_i32_1 = arith.constant 0 : i32
    return %c0_i32, %c0_i32_0 : i32, i32
  }
  func.func @transform_4(%arg0: i32) -> (i32, i32) {
    %c0_i32 = arith.constant 0 : i32
    %c0_i32_0 = arith.constant 0 : i32
    %c0_i32_1 = arith.constant 0 : i32
    return %c0_i32, %c0_i32_0 : i32, i32
  }
  func.func @transform_5(%arg0: i32) -> (i32, i32) {
    %c0_i32 = arith.constant 0 : i32
    %c0_i32_0 = arith.constant 0 : i32
    return %arg0, %c0_i32 : i32, i32
  }
  func.func @transform_6(%arg0: i32) -> (i32, i32) {
    %c0_i32 = arith.constant 0 : i32
    %c0_i32_0 = arith.constant 0 : i32
    return %arg0, %c0_i32 : i32, i32
  }
  func.func @transform_7(%arg0: i32) -> (i32, i32) {
    %c0_i32 = arith.constant 0 : i32
    %c0_i32_0 = arith.constant 0 : i32
    return %arg0, %c0_i32 : i32, i32
  }
}

</mosaic_0001>

<bundles_post_ra>
// kernel: tpu_custom_call.1
= control target key start
LH: loop header
LB: loop body
LE: loop exit
PB: predicated region body
PF: predicated region fallthrough
CT: control target
= control target key end

     0   :  { %6 = vsyncpa [#allocation3], 0  ;;  %s441_s0 = inlined_call_operand.hbm [shape: f32[16,128], index: 0, kind: input, shape index: {}]   ;;  %s442_s1 = inlined_call_operand.hbm [shape: f32[16,128], index: 1, kind: output, shape index: {}]  }
   0x1   :  { %7 = vsyncpa [#allocation4], 0 }
   0x2   :  { %9 = vsyncpa [#allocation4 + $0x1], 0  ;;  %s357_s6 = smov 0   ;;  %s359_s7 = smov 0  }
   0x3   :  { %s361_s8 = smov 0   ;;  %s363_s9 = smov 0  }
   0x4 LB: > { %s378_s10 = sadd.s32 4294967295, %s344_s9   ;;  %s188_s11 = sadd.s32 4294967294, %s344_s9   ;;  %s344_s9 = sphi %s363_s9, %s448_s9   ;;  %s340_s8 = sphi %s361_s8, %s447_s8   ;;  %s336_s7 = sphi %s359_s7, %s446_s7   ;;  %s332_s6 = sphi %s357_s6, %s445_s6  }
   0x5   : > { %s382_s12 = sadd.s32 1, %s344_s9   ;;  %s43_s13 = sadd.s32 1, %s340_s8 }
   0x6   : > { %s40_s14 = ssub.s32 %s344_s9, %s382_s12  ;;  %p53_p0 = scmp.ne.s32.totalorder %s340_s8, %s336_s7 }
   0x7   : > { %p41_p1 = scmp.eq.s32.totalorder %s40_s14, 0  ;;  %p54_p2 = scmp.eq.s32.totalorder %s378_s10, 1 }
   0x8   : > { %p59_p3 = scmp.ne.s32.totalorder %s336_s7, %s332_s6  ;;  %p60_p4 = scmp.eq.s32.totalorder %s188_s11, 1 }
   0x9   : > { %s393_s15 = scalar_select %p41_p1, %s340_s8, %s43_s13  }
   0xa   : > { %p395_p5 = por %p54_p2, %p53_p0  ;;  %p399_p6 = por %p60_p4, %p59_p3 }
   0xb   : > { %p189_p7 = scmp.ge.s32.totalorder %s344_s9, 1  ;;  %p67_p8 = scmp.lt.s32.totalorder %s344_s9, 3 }
   0xc   : > { %p212_p9 = scmp.eq.s32.totalorder %s378_s10, 0  ;;  %s79_s20 = sshll.u32 %s441_s0, 4  ;;  %s80_s20 = int_to_ptr.hbm [resolvable:$true] %s79_s20 }
   0xd   : > { %p68_p10 = pnand %p189_p7, %p67_p8  ;;  %s346_s21 = smov [#allocation2]  }
   0xe   : > { %s81_s22 = sshll.u32 %s346_s21, 4  ;;  %s82_s22 = int_to_ptr.vmem [resolvable:$true] %s81_s22 }
   0xf   : > { %p204_p11 = pneg %p68_p10  ;;  %94 = sbr.rel (%p68_p10) target bundleno = 37 (0x25), region = 24 }
  0x11   : > { %p205_p12 = pnand %p212_p9, %p204_p11 }
  0x13   : > { %207 = dma.hbm_to_vmem [thread:$0]  (!%p205_p12), %s80_s20, 128, %s82_s22, [#allocation3]  }
  0x14   : > { %323 = dma.done.wait (%p212_p9), [#allocation3], 128  }
  0x15   : > { %325 = vsyncadd (%p212_p9), [#allocation3], 4294967168  ;;  %s107_s23 = sand.u32 1, %s336_s7   ;;  %s195_s24 = sshll.u32 %s378_s10, 3  ;;  %v110_v0 = vld [vmem:[#allocation2] sm:$0xff] }
  0x16   : > { %s193_s25 = sshll.u32 %s107_s23, 3  ;;  %s124_s28 = scalar_lea.hbm %s442_s1, %s195_s24  ;;  %v111_v1 = vadd.f32 1.0, %v110_v0 }
  0x17   : > { %s109_s29 = scalar_lea.vmem [#allocation5], %s193_s25  ;;  %s128_s2 = sshll.u32 %s124_s28, 4  ;;  %s129_s2 = int_to_ptr.hbm [resolvable:$true] %s128_s2 }
  0x18   : > { %s126_s30 = sshll.u32 %s109_s29, 4  ;;  %112 = vst [vmem:[%s109_s29] sm:$0xff] %v111_v1  ;;  %s114_s3 = scalar_lea.sflag [#allocation4], %s107_s23  ;;  %s127_s30 = int_to_ptr.vmem [resolvable:$true] %s126_s30 }
  0x19   : > { %s292_s4 = sshra.s32 %s129_s2, 4  ;;  %s298_s13 = scalar_lea.hbm %s442_s1, 16  ;;  %s293_s4 = int_to_ptr.hbm [resolvable:$true] %s292_s4 }
  0x1a   : > { %s294_s5 = scalar_lea.hbm %s293_s4, 8  ;;  %p299_p2 = scmp.lt.s32.totalorder %s293_s4, %s442_s1 }
  0x1b   : > { %p295_p13 = scmp.ne.s32.totalorder %s293_s4, %s294_s5  ;;  %p300_p3 = scmp.lt.s32.totalorder %s298_s13, %s294_s5 }
  0x1d   : > { %p296_p0 = pnand %p295_p13, %p395_p5  ;;  %p301_p4 = por %p300_p3, %p299_p2 }
  0x1f   : > { %p297_p1 = pneg %p296_p0 }
  0x21   : > { %p302_p7 = pnand %p301_p4, %p297_p1 }
  0x23   : > { %305 = shalt.err (!%p302_p7)
}
  0x24   : > { %202 = dma.vmem_to_hbm [thread:$0]  (%p395_p5), %s127_s30, 128, %s129_s2, %s114_s3  }
  0x25 PF: > { %p214_p8 = scmp.ge.s32.totalorder %s344_s9, 2  ;;  %s140_s19 = sand.u32 1, %s332_s6  }
  0x26   : > { %s141_s20 = scalar_lea.sflag [#allocation4], %s140_s19 }
  0x27   : > { %p209_p9 = pnand %p214_p8, %p399_p6 }
  0x29   : > { %p210_p10 = pneg %p209_p9 }
  0x2b   : > { %327 = dma.done.wait (%p210_p10), %s141_s20, 128  }
  0x2c   : > { %329 = vsyncadd (%p210_p10), %s141_s20, 4294967168  ;;  %p12_p11 = scmp.ge.s32.totalorder %s382_s12, 4   ;;  %s445_s6 = smov %s336_s7 }
  0x2d   : > { %s446_s7 = smov %s340_s8  ;;  %s447_s8 = smov %s393_s15 }
  0x2e   : > { %s448_s9 = smov %s382_s12  ;;  %14 = sbr.rel (!%p12_p11) target bundleno = 4 (0x4), region = 61 }
  0x33   :  { %147 = vsyncpa [#allocation3], 1 }
  0x34   :  { %149 = vsyncpa [#allocation3 + $0x1], 1 }
  0x35   :  { %150 = vsyncpa [#allocation4], 1 }
  0x36   :  { %152 = vsyncpa [#allocation4 + $0x1], 1 }

// kernel: tpu_custom_call.1
= control target key start
LH: loop header
LB: loop body
LE: loop exit
PB: predicated region body
PF: predicated region fallthrough
CT: control target
= control target key end

     0   :  { %s3840_s0 = inlined_call_operand.hbm [shape: bf16[512,384], index: 0, kind: input, shape index: {}]   ;;  %s3841_s1 = inlined_call_operand.hbm [shape: bf16[384,128], index: 1, kind: input, shape index: {}]   ;;  %s3842_s2 = inlined_call_operand.hbm [shape: f32[1,128], index: 2, kind: input, shape index: {}]   ;;  %s3843_s3 = inlined_call_operand.hbm [shape: bf16[128,384], index: 3, kind: input, shape index: {}]   ;;  %s3844_s4 = inlined_call_operand.vmem [shape: f32[1,384], index: 4, kind: input, shape index: {}]   ;;  %s3845_s5 = inlined_call_operand.hbm [shape: bf16[512,128], index: 5, kind: output, shape index: {0}]   ;;  %s3846_s6 = inlined_call_operand.hbm [shape: bf16[512,128], index: 6, kind: output, shape index: {1}]   ;;  %s3847_s7 = inlined_call_operand.hbm [shape: bf16[512,128], index: 7, kind: output, shape index: {2}]  }
   0x1   :  { %3851 = sst [smem:[#allocation19_spill]] %s3841_s1 }
   0x2   :  { %3852 = sst [smem:[#allocation20_spill]] %s3842_s2 }
   0x3   :  { %3853 = sst [smem:[#allocation21_spill]] %s3843_s3 }
   0x4   :  { %13 = vsyncpa [#allocation3], 0 }
   0x5   :  { %15 = vsyncpa [#allocation3 + $0x1], 0 }
   0x6   :  { %16 = vsyncpa [#allocation6], 0 }
   0x7   :  { %17 = vsyncpa [#allocation9], 0 }
   0x8   :  { %18 = vsyncpa [#allocation4], 0 }
   0x9   :  { %20 = vsyncpa [#allocation4 + $0x1], 0 }
   0xa   :  { %21 = vsyncpa [#allocation12], 0 }
   0xb   :  { %23 = vsyncpa [#allocation12 + $0x1], 0  ;;  %s3235_s24 = smov 0   ;;  %s3237_s25 = smov 0  }
   0xc   :  { %s3239_s26 = smov 0   ;;  %s3241_s27 = smov 0  }
   0xd LB: > { %s3256_s28 = sadd.s32 4294967295, %s3184_s27   ;;  %s3848_s29 = sadd.s32 4294967294, %s3184_s27   ;;  %s3184_s27 = sphi %s3241_s27, %s3870_s27   ;;  %s3180_s26 = sphi %s3239_s26, %s3869_s26   ;;  %s3176_s25 = sphi %s3237_s25, %s3868_s25   ;;  %s3172_s24 = sphi %s3235_s24, %s3867_s24  }
   0xe   : > { %p49_p0 = scmp.ne.s32.totalorder %s3176_s25, %s3172_s24  ;;  %p50_p1 = scmp.eq.s32.totalorder %s3256_s28, 0 }
   0xf   : > { %p157_p2 = scmp.eq.s32.totalorder %s3256_s28, 1  ;;  %p163_p3 = scmp.eq.s32.totalorder %s3848_s29, 1 }
  0x10   : > { %p3267_p4 = por %p50_p1, %p49_p0  ;;  %p2022_p5 = scmp.ge.s32.totalorder %s3184_s27, 1 }
  0x11   : > { %p3272_p6 = por %p163_p3, %p49_p0  ;;  %p222_p7 = scmp.lt.s32.totalorder %s3184_s27, 3 }
  0x12   : > { %s3856_s1 = sld [smem:[#allocation19_spill]]  ;;  %s3186_s13 = smov [#allocation5]  }
  0x13   : > { %p3280_p8 = pnand %p2022_p5, %p222_p7  ;;  %s235_s14 = sshll.u32 %s3186_s13, 4  ;;  %s236_s14 = int_to_ptr.vmem [resolvable:$true] %s235_s14 }
  0x14   : > { %s3859_s2 = sld [smem:[#allocation20_spill]]  ;;  %s3187_s19 = smov 64  }
  0x15   : > { %p2855_p9 = pneg %p3280_p8  ;;  %s3188_s20 = smov 4  }
  0x16   : > { %s3189_s21 = smov [#allocation7]   ;;  %s3860_s3 = sld [smem:[#allocation21_spill]] }
  0x17   : > { %p3288_p10 = pnand %p2855_p9, %p50_p1  ;;  %s250_s22 = sshll.u32 %s3189_s21, 4  ;;  %s251_s22 = int_to_ptr.vmem [resolvable:$true] %s250_s22 }
  0x18   : > { %s233_s11 = sshll.u32 %s3856_s1, 4  ;;  %s3190_s13 = smov [#allocation8]   ;;  %s234_s11 = int_to_ptr.hbm [resolvable:$true] %s233_s11 }
  0x19   : > { %2858 = dma.hbm_to_vmem [thread:$0]  (!%p3288_p10), %s234_s11, 3072, %s236_s14, [#allocation6], %s3187_s19, %s3187_s19, %s3188_s20  }
  0x1a   : > { %s248_s18 = sshll.u32 %s3859_s2, 4  ;;  %s261_s16 = sshll.u32 %s3190_s13, 4  ;;  %s249_s18 = int_to_ptr.hbm [resolvable:$true] %s248_s18  ;;  %s262_s16 = int_to_ptr.vmem [resolvable:$true] %s261_s16 }
  0x1b   : > { %2861 = dma.hbm_to_vmem [thread:$0]  (!%p3288_p10), %s249_s18, 16, %s251_s22, [#allocation6]  }
  0x1c   : > { %s259_s10 = sshll.u32 %s3860_s3, 4  ;;  %s3849_s11 = smov 192   ;;  %s260_s10 = int_to_ptr.hbm [resolvable:$true] %s259_s10 }
  0x1d   : > { %s3850_s14 = smov 12   ;;  %s3309_s17 = sadd.s32 1, %s3184_s27  }
  0x1e   : > { %2864 = dma.hbm_to_vmem [thread:$0]  (!%p3288_p10), %s260_s10, 3072, %s262_s16, [#allocation9], %s3849_s11, %s3849_s11, %s3850_s14  }
  0x1f   : > { %s33_s19 = ssub.s32 %s3184_s27, %s3309_s17  ;;  %s36_s20 = sadd.s32 1, %s3180_s26 }
  0x20   : > { %p34_p12 = scmp.eq.s32.totalorder %s33_s19, 0  ;;  %p43_p13 = scmp.ne.s32.totalorder %s3180_s26, %s3176_s25 }
  0x21   : > { %p44_p0 = scmp.eq.s32.totalorder %s3184_s27, 0  ;;  %p2882_p3 = scmp.lt.s32.totalorder %s3184_s27, 2 }
  0x22   : > { %s3319_s18 = scalar_select %p34_p12, %s3180_s26, %s36_s20  }
  0x23   : > { %p45_p5 = por %p44_p0, %p43_p13  ;;  %p3323_p7 = por %p157_p2, %p43_p13 }
  0x24   : > { %s278_s15 = sand.u32 1, %s3180_s26   ;;  %s2833_s22 = smul.u32 384, %s3184_s27 }
  0x25   : > { %s2832_s23 = smul.u32 384, %s278_s15  ;;  %p3332_p9 = pnand %p2882_p3, %p45_p5 }
  0x26   : > { %s288_s13 = scalar_lea.hbm %s3840_s0, %s2833_s22  ;;  %s279_s11 = scalar_lea.sflag [#allocation3], %s278_s15 }
  0x27   : > { %s289_s19 = sshll.u32 %s288_s13, 4  ;;  %s282_s20 = scalar_lea.vmem [#allocation2], %s2832_s23  ;;  %s290_s19 = int_to_ptr.hbm [resolvable:$true] %s289_s19 }
  0x28   : > { %s291_s29 = sshll.u32 %s282_s20, 4  ;;  %s3020_s14 = sshra.s32 %s290_s19, 4  ;;  %s292_s29 = int_to_ptr.vmem [resolvable:$true] %s291_s29  ;;  %s3021_s14 = int_to_ptr.hbm [resolvable:$true] %s3020_s14 }
  0x29   : > { %s3022_s1 = scalar_lea.hbm %s3021_s14, 384  ;;  %p3024_p10 = pneg %p3332_p9 }
  0x2a   : > { %p3023_p2 = scmp.ne.s32.totalorder %s3021_s14, %s3022_s1  ;;  %s3027_s10 = scalar_lea.hbm %s3840_s0, 768 }
  0x2b   : > { %p3028_p0 = scmp.lt.s32.totalorder %s3021_s14, %s3840_s0  ;;  %p3029_p3 = scmp.lt.s32.totalorder %s3027_s10, %s3022_s1 }
  0x2c   : > { %p3025_p12 = pnand %p3024_p10, %p3023_p2 }
  0x2d   : > { %p3030_p5 = por %p3029_p3, %p3028_p0 }
  0x2e   : > { %p3026_p13 = pneg %p3025_p12 }
  0x30   : > { %p3031_p11 = pnand %p3030_p5, %p3026_p13 }
  0x32   : > { %3034 = shalt.err (!%p3031_p11)
}
  0x33   : > { %s3863_s15 = smov 12   ;;  %s3864_s23 = smov 192  }
  0x34   : > { %2868 = dma.hbm_to_vmem [thread:$0]  (!%p3332_p9), %s290_s19, 6144, %s292_s29, %s279_s11, %s3864_s23, %s3864_s23, %s3863_s15  }
  0x35   : > { %303 = sbr.rel (%p3280_p8) target bundleno = 781 (0x30d), region = 40  ;;  %s3352_s13 = sand.u32 (!%p3280_p8), 1, %s3176_s25  }
  0x36   : > { %s2834_s2 = smul.u32 (!%p3280_p8), 384, %s3352_s13  ;;  %s306_s1 = scalar_lea.sflag (!%p3280_p8), [#allocation3], %s3352_s13 }
  0x38   : > { %s3356_s3 = scalar_lea.vmem (!%p3280_p8), [#allocation2], %s2834_s2 }
  0x3a   : > { %3151 = dma.done.wait (%p3267_p4), %s306_s1, 6144  }
  0x3b   : > { %3153 = vsyncadd (%p3267_p4), %s306_s1, 4294961152 }
  0x3c   : > { %3155 = dma.done.wait (%p50_p1), [#allocation6], 3088  }
  0x3d   : > { %3157 = vsyncadd (%p50_p1), [#allocation6], 4294964208 }
  0x3e   : > { %3159 = dma.done.wait (%p50_p1), [#allocation9], 3072  }
  0x3f   : > { %3161 = vsyncadd (%p50_p1), [#allocation9], 4294964224  ;;  %v2487_v0 = vld [vmem:[#allocation5 + $0x38] sm:$0xff]  ;;  %v2486_v2 = vld [vmem:[#allocation5 + $0x30] sm:$0xff]  ;;  %s2034_s12 = sshll.u32 %s3352_s13, 7  ;;  %s2528_s19 = sshll.u32 %s3256_s28, 7 }
  0x40   : > { %v2495_v1 = vld [vmem:[#allocation5 + $0x78] sm:$0xff]  ;;  %2816 = vmatpush.bf16.msra.mxu2 %v2487_v0  ;;  %v2494_v3 = vld [vmem:[#allocation5 + $0x70] sm:$0xff]  ;;  %886 = vmatpush.bf16.msra.mxu0 %v2487_v0  ;;  %v2485_v4 = vld [vmem:[#allocation5 + $0x28] sm:$0xff]  ;;  %s3561_s11 = scalar_lea.vmem [#allocation11], %s2034_s12  ;;  %s3566_s14 = scalar_lea.vmem [#allocation13], %s2034_s12 }
  0x41   : > { %2824 = vmatpush.bf16.msra.mxu3 %v2495_v1  ;;  %975 = vmatpush.bf16.msra.mxu1 %v2495_v1  ;;  %v2493_v5 = vld [vmem:[#allocation5 + $0x68] sm:$0xff]  ;;  %v2484_v6 = vld [vmem:[#allocation5 + $0x20] sm:$0xff]  ;;  %v2483_v8 = vld [vmem:[#allocation5 + $0x18] sm:$0xff]  ;;  %s3570_s16 = scalar_lea.vmem [#allocation10], %s2034_s12  ;;  %s1801_s20 = sand.u32 1, %s3256_s28  }
  0x42   : > { %v2492_v7 = vld [vmem:[#allocation5 + $0x60] sm:$0xff]  ;;  %v2491_v9 = vld [vmem:[#allocation5 + $0x58] sm:$0xff]  ;;  %v2482_v10 = vld [vmem:[#allocation5 + $0x10] sm:$0xff]  ;;  %s1835_s10 = scalar_lea.hbm %s3846_s6, %s2528_s19  ;;  %s1836_s15 = sshll.u32 %s3561_s11, 4  ;;  %s3737_s15 = int_to_ptr.vmem [resolvable:$true] %s1836_s15 }
  0x43   : > { %v2490_v11 = vld [vmem:[#allocation5 + $0x50] sm:$0xff]  ;;  %v2481_v12 = vld [vmem:[#allocation5 + $0x8] sm:$0xff]  ;;  %v2480_v14 = vld [vmem:[#allocation5] sm:$0xff]  ;;  %s1852_s1 = scalar_lea.hbm %s3847_s7, %s2528_s19  ;;  %s1818_s30 = scalar_lea.hbm %s3845_s5, %s2528_s19 }
  0x44   : > { %2817 = vmatpush.bf16.msra.mxu2 %v2486_v2  ;;  %887 = vmatpush.bf16.msra.mxu0 %v2486_v2  ;;  %v2489_v13 = vld [vmem:[#allocation5 + $0x48] sm:$0xff]  ;;  %v2488_v15 = vld [vmem:[#allocation5 + $0x40] sm:$0xff]  ;;  %v2137_v19 = vld [vmem:[%s3356_s3 + $0xcc] sm:$0xf0]  ;;  %s3739_s12 = sshll.u32 %s1835_s10, 4  ;;  %s3741_s22 = sshll.u32 %s1852_s1, 4  ;;  %s1839_s12 = int_to_ptr.hbm [resolvable:$true] %s3739_s12  ;;  %s1856_s22 = int_to_ptr.hbm [resolvable:$true] %s3741_s22 }
  0x45   : > { %2825 = vmatpush.bf16.msra.mxu3 %v2494_v3  ;;  %976 = vmatpush.bf16.msra.mxu1 %v2494_v3  ;;  %v2135_v16 = vld [vmem:[%s3356_s3 + $0xc0] sm:$0xf]  ;;  %v2457_v17 = vld [vmem:[%s3356_s3 + $0xc8] sm:$0xf0]  ;;  %v2456_v18 = vld [vmem:[%s3356_s3 + $0xc4] sm:$0xf] }
  0x46   : > { %v2503_v20 = vld [vmem:[#allocation5 + $0xb8] sm:$0xff]  ;;  %v2136_v21 = vor.u32 %v2457_v17, %v2135_v16  ;;  %v2140_v22 = vor.u32 %v2456_v18, %v2137_v19  ;;  %v2502_v23 = vld [vmem:[#allocation5 + $0xb0] sm:$0xff]  ;;  %v2501_v24 = vld [vmem:[#allocation5 + $0xa8] sm:$0xff]  ;;  %s1853_s9 = sshll.u32 %s3566_s14, 4  ;;  %s1819_s19 = sshll.u32 %s3570_s16, 4  ;;  %s3750_s9 = int_to_ptr.vmem [resolvable:$true] %s1853_s9  ;;  %s3755_s19 = int_to_ptr.vmem [resolvable:$true] %s1819_s19 }
  0x47   : > { %v2147_v25 = vld [vmem:[%s3356_s3 + $0xd8] sm:$0xf]  ;;  %v2460_v26 = vld [vmem:[%s3356_s3 + $0xe0] sm:$0xf0]  ;;  %v2459_v27 = vld [vmem:[%s3356_s3 + $0xdc] sm:$0xf] }
  0x48   : > { %2818 = vmatpush.bf16.msra.mxu2 %v2485_v4  ;;  %888 = vmatpush.bf16.msra.mxu0 %v2485_v4  ;;  %v2149_v28 = vld [vmem:[%s3356_s3 + $0xe4] sm:$0xf0]  ;;  %v2148_v29 = vor.u32 %v2460_v26, %v2147_v25  ;;  %v2500_v31 = vld [vmem:[#allocation5 + $0xa0] sm:$0xff]  ;;  %v2159_v32 = vld [vmem:[%s3356_s3 + $0xf0] sm:$0xf]  ;;  %s3745_s23 = sshll.u32 %s1818_s30, 4  ;;  %s1822_s23 = int_to_ptr.hbm [resolvable:$true] %s3745_s23 }
  0x49   : > { %2826 = vmatpush.bf16.msra.mxu3 %v2493_v5  ;;  %977 = vmatpush.bf16.msra.mxu1 %v2493_v5  ;;  %v2152_v30 = vor.u32 %v2459_v27, %v2149_v28  ;;  %v2463_v33 = vld [vmem:[%s3356_s3 + $0xf8] sm:$0xf0]  ;;  %v2462_v34 = vld [vmem:[%s3356_s3 + $0xf4] sm:$0xf]  ;;  %v2161_v35 = vld [vmem:[%s3356_s3 + $0xfc] sm:$0xf0] }
  0x4a   : > { %v2160_v36 = vor.u32 %v2463_v33, %v2159_v32  ;;  %v2164_v37 = vor.u32 %v2462_v34, %v2161_v35  ;;  %v2499_v38 = vld [vmem:[#allocation5 + $0x98] sm:$0xff]  ;;  %v2171_v39 = vld [vmem:[%s3356_s3 + $0x108] sm:$0xf]  ;;  %v2466_v40 = vld [vmem:[%s3356_s3 + $0x110] sm:$0xf0]  ;;  %s3760_s10 = scalar_lea.sflag [#allocation12], %s1801_s20 }
  0x4b   : > { %v2465_v41 = vld [vmem:[%s3356_s3 + $0x10c] sm:$0xf]  ;;  %v2173_v42 = vld [vmem:[%s3356_s3 + $0x114] sm:$0xf0]  ;;  %v2172_v43 = vor.u32 %v2466_v40, %v2171_v39  ;;  %v2498_v45 = vld [vmem:[#allocation5 + $0x90] sm:$0xff]  ;;  %s3064_s2 = sshra.s32 %s1839_s12, 4  ;;  %s3065_s2 = int_to_ptr.hbm [resolvable:$true] %s3064_s2 }
  0x4c   : > { %2819 = vmatpush.bf16.msra.mxu2 %v2484_v6  ;;  %889 = vmatpush.bf16.msra.mxu0 %v2484_v6  ;;  %v2176_v44 = vor.u32 %v2465_v41, %v2173_v42  ;;  %v2183_v46 = vld [vmem:[%s3356_s3 + $0x120] sm:$0xf]  ;;  %v2469_v47 = vld [vmem:[%s3356_s3 + $0x128] sm:$0xf0]  ;;  %v2468_v48 = vld [vmem:[%s3356_s3 + $0x124] sm:$0xf]  ;;  %p3071_p11 = scmp.lt.s32.totalorder %s3065_s2, %s3846_s6 }
  0x4d   : > { %2827 = vmatpush.bf16.msra.mxu3 %v2492_v7  ;;  %978 = vmatpush.bf16.msra.mxu1 %v2492_v7  ;;  %v2185_v49 = vld [vmem:[%s3356_s3 + $0x12c] sm:$0xf0]  ;;  %v2184_v50 = vor.u32 %v2469_v47, %v2183_v46  ;;  %v2497_v52 = vld [vmem:[#allocation5 + $0x88] sm:$0xff]  ;;  %v2195_v53 = vld [vmem:[%s3356_s3 + $0x138] sm:$0xf]  ;;  %s3066_s1 = scalar_lea.hbm %s3065_s2, 128 }
  0x4e   : > { %v2188_v51 = vor.u32 %v2468_v48, %v2185_v49  ;;  %v2472_v54 = vld [vmem:[%s3356_s3 + $0x140] sm:$0xf0]  ;;  %v2471_v55 = vld [vmem:[%s3356_s3 + $0x13c] sm:$0xf]  ;;  %v2197_v56 = vld [vmem:[%s3356_s3 + $0x144] sm:$0xf0]  ;;  %p3067_p1 = scmp.ne.s32.totalorder %s3065_s2, %s3066_s1 }
  0x4f   : > { %v2196_v57 = vor.u32 %v2472_v54, %v2195_v53  ;;  %v2200_v58 = vor.u32 %v2471_v55, %v2197_v56  ;;  %v2496_v59 = vld [vmem:[#allocation5 + $0x80] sm:$0xff]  ;;  %v2433_v61 = vld [vmem:[%s3356_s3 + $0x8] sm:$0xf0]  ;;  %v2041_v0 = vld [vmem:[%s3356_s3 + $0xc] sm:$0xf0] }
  0x50   : > { %2820 = vmatpush.bf16.msra.mxu2 %v2483_v8  ;;  %890 = vmatpush.bf16.msra.mxu0 %v2483_v8  ;;  %v2039_v60 = vld [vmem:[%s3356_s3] sm:$0xf]  ;;  %v2432_v63 = vld [vmem:[%s3356_s3 + $0x4] sm:$0xf]  ;;  %v2207_v2 = vld [vmem:[%s3356_s3 + $0x150] sm:$0xf]  ;;  %p3068_p4 = pnand %p3067_p1, %p3323_p7 }
  0x51   : > { %2828 = vmatpush.bf16.msra.mxu3 %v2491_v9  ;;  %979 = vmatpush.bf16.msra.mxu1 %v2491_v9  ;;  %v2040_v62 = vor.u32 %v2433_v61, %v2039_v60  ;;  %v2044_v1 = vor.u32 %v2432_v63, %v2041_v0  ;;  %v2475_v3 = vld [vmem:[%s3356_s3 + $0x158] sm:$0xf0]  ;;  %v2474_v4 = vld [vmem:[%s3356_s3 + $0x154] sm:$0xf]  ;;  %v2209_v5 = vld [vmem:[%s3356_s3 + $0x15c] sm:$0xf0] }
  0x52   : > { %v2208_v6 = vor.u32 %v2475_v3, %v2207_v2  ;;  %v2212_v7 = vor.u32 %v2474_v4, %v2209_v5  ;;  %v2051_v8 = vld [vmem:[%s3356_s3 + $0x18] sm:$0xf]  ;;  %v2436_v9 = vld [vmem:[%s3356_s3 + $0x20] sm:$0xf0]  ;;  %v2053_v16 = vld [vmem:[%s3356_s3 + $0x24] sm:$0xf0]  ;;  %p3069_p8 = pneg %p3068_p4 }
  0x53   : > { %v2419_v25 = vld [vmem:[#allocation8 + $0xb0] sm:$0xf]  ;;  %v2527_v27 = vld [vmem:[#allocation8 + $0xb8] sm:$0xf0]  ;;  %v2522_v46 = vld [vmem:[#allocation8 + $0x94] sm:$0xf] }
  0x54   : > { %2821 = vmatpush.bf16.msra.mxu2 %v2482_v10  ;;  %891 = vmatpush.bf16.msra.mxu0 %v2482_v10  ;;  %v2052_v10 = vor.u32 %v2436_v9, %v2051_v8  ;;  %v2063_v28 = vld [vmem:[%s3356_s3 + $0x30] sm:$0xf]  ;;  %v2434_v33 = vld [vmem:[%s3356_s3 + $0x10] sm:$0xf0]  ;;  %v2065_v35 = vld [vmem:[%s3356_s3 + $0x3c] sm:$0xf0] }
  0x55   : > { %2829 = vmatpush.bf16.msra.mxu3 %v2490_v11  ;;  %980 = vmatpush.bf16.msra.mxu1 %v2490_v11  ;;  %v2219_v11 = vld [vmem:[%s3356_s3 + $0x168] sm:$0xf]  ;;  %v2438_v34 = vld [vmem:[%s3356_s3 + $0x34] sm:$0xf]  ;;  %v2523_v40 = vld [vmem:[#allocation8 + $0x98] sm:$0xf0] }
  0x56   : > { %v2399_v39 = vld [vmem:[#allocation8 + $0x90] sm:$0xf]  ;;  %v2401_v47 = vld [vmem:[#allocation8 + $0x9c] sm:$0xf0]  ;;  %v2407_v48 = vld [vmem:[#allocation8 + $0x98] sm:$0xf] }
  0x57   : > { %v2400_v41 = vor.u32 %v2523_v40, %v2399_v39  ;;  %v2404_v49 = vor.u32 %v2522_v46, %v2401_v47  ;;  %v2059_v53 = vld [vmem:[%s3356_s3 + $0x20] sm:$0xf]  ;;  %v2437_v56 = vld [vmem:[%s3356_s3 + $0x28] sm:$0xf0]  ;;  %v2387_v63 = vld [vmem:[#allocation8 + $0x78] sm:$0xf] }
  0x58   : > { %2822 = vmatpush.bf16.msra.mxu2 %v2481_v12  ;;  %892 = vmatpush.bf16.msra.mxu0 %v2481_v12  ;;  %v2478_v12 = vld [vmem:[%s3356_s3 + $0x170] sm:$0xf0]  ;;  %v2520_v0 = vld [vmem:[#allocation8 + $0x80] sm:$0xf0]  ;;  %v2395_v8 = vld [vmem:[#allocation8 + $0x80] sm:$0xf] }
  0x59   : > { %2830 = vmatpush.bf16.msra.mxu3 %v2489_v13  ;;  %981 = vmatpush.bf16.msra.mxu1 %v2489_v13  ;;  %v2477_v13 = vld [vmem:[%s3356_s3 + $0x16c] sm:$0xf]  ;;  %v2220_v18 = vor.u32 %v2478_v12, %v2219_v11  ;;  %v2087_v11 = vld [vmem:[%s3356_s3 + $0x60] sm:$0xf] }
  0x5a   : > { %v2445_v12 = vld [vmem:[%s3356_s3 + $0x68] sm:$0xf0] }
  0x5c   : > { %2823 = vmatpush.bf16.msra.mxu2 %v2480_v14  ;;  %893 = vmatpush.bf16.msra.mxu0 %v2480_v14  ;;  %v2221_v14 = vld [vmem:[%s3356_s3 + $0x174] sm:$0xf0] }
  0x5d   : > { %2831 = vmatpush.bf16.msra.mxu3 %v2488_v15  ;;  %982 = vmatpush.bf16.msra.mxu1 %v2488_v15  ;;  %v2435_v15 = vld [vmem:[%s3356_s3 + $0x1c] sm:$0xf]  ;;  %v2224_v19 = vor.u32 %v2477_v13, %v2221_v14  ;;  %v2071_v13 = vld [vmem:[%s3356_s3 + $0x38] sm:$0xf] }
  0x5e   : > { %v2056_v17 = vor.u32 %v2435_v15, %v2053_v16  ;;  %v2088_v15 = vor.u32 %v2445_v12, %v2087_v11  ;;  %v2440_v16 = vld [vmem:[%s3356_s3 + $0x40] sm:$0xf0]  ;;  %v2351_v12 = vld [vmem:[#allocation8 + $0x30] sm:$0xf] }
  0x5f   : > { %934 = vmatmul.bf16.vlgmr.msra.gmra.mxu2 %v2136_v21  ;;  %894 = vmatmul.bf16.vlgmr.msra.gmra.mxu0 %v2040_v62  ;;  %v2526_v21 = vld [vmem:[#allocation8 + $0xb0] sm:$0xf0]  ;;  %v2060_v62 = vor.u32 %v2437_v56, %v2059_v53  ;;  %v2513_v56 = vld [vmem:[#allocation8 + $0x4c] sm:$0xf] }
  0x60   : > { %1064 = vmatpush.bf16.msrb.mxu2 %v2503_v20  ;;  %1023 = vmatmul.bf16.vlgmr.msra.gmra.mxu3 %v2140_v22  ;;  %v2411_v20 = vld [vmem:[#allocation8 + $0xa8] sm:$0xf] }
  0x61   : > { %983 = vmatmul.bf16.vlgmr.msra.gmra.mxu1 %v2044_v1  ;;  %v2412_v22 = vor.u32 %v2526_v21, %v2411_v20  ;;  %v2388_v1 = vor.u32 %v2520_v0, %v2387_v63  ;;  %v2111_v63 = vld [vmem:[%s3356_s3 + $0x90] sm:$0xf]  ;;  %v2451_v0 = vld [vmem:[%s3356_s3 + $0x98] sm:$0xf0] }
  0x63   : > { %1337 = vmatpush.bf16.msrb.mxu3 %v2412_v22  ;;  %v2072_v22 = vor.u32 %v2440_v16, %v2071_v13  ;;  %v2511_v13 = vld [vmem:[#allocation8 + $0x38] sm:$0xf0] }
  0x64   : > { %1065 = vmatpush.bf16.msrb.mxu2 %v2502_v23  ;;  %v2525_v23 = vld [vmem:[#allocation8 + $0xac] sm:$0xf] }
  0x67   : > { %1338 = vmatpush.bf16.msrb.mxu3 %v2400_v41  ;;  %v2443_v41 = vld [vmem:[%s3356_s3 + $0x58] sm:$0xf0] }
  0x68   : > { %1066 = vmatpush.bf16.msrb.mxu2 %v2501_v24  ;;  %v2413_v24 = vld [vmem:[#allocation8 + $0xb4] sm:$0xf0] }
  0x69   : > { %v2416_v26 = vor.u32 %v2525_v23, %v2413_v24  ;;  %v2375_v23 = vld [vmem:[#allocation8 + $0x60] sm:$0xf]  ;;  %v2517_v24 = vld [vmem:[#allocation8 + $0x68] sm:$0xf0] }
  0x6b   : > { %1426 = vmatpush.bf16.msrb.mxu0 %v2416_v26  ;;  %1339 = vmatpush.bf16.msrb.mxu3 %v2388_v1  ;;  %v2095_v1 = vld [vmem:[%s3356_s3 + $0x68] sm:$0xf] }
  0x6c   : > { %1067 = vmatpush.bf16.msrb.mxu2 %v2500_v31  ;;  %v2420_v31 = vor.u32 %v2527_v27, %v2419_v25  ;;  %v2376_v25 = vor.u32 %v2517_v24, %v2375_v23  ;;  %v2359_v23 = vld [vmem:[#allocation8 + $0x38] sm:$0xf] }
  0x6e   : > { %1515 = vmatpush.bf16.msrb.mxu1 %v2420_v31  ;;  %v2377_v31 = vld [vmem:[#allocation8 + $0x6c] sm:$0xf0] }
  0x6f   : > { %939 = vmatmul.bf16.gmra.mxu2 %v2148_v29  ;;  %899 = vmatmul.bf16.gmra.mxu0 %v2052_v10  ;;  %v2439_v29 = vld [vmem:[%s3356_s3 + $0x38] sm:$0xf0]  ;;  %v2521_v10 = vld [vmem:[#allocation8 + $0x88] sm:$0xf0] }
  0x70   : > { %1028 = vmatmul.bf16.gmra.mxu3 %v2152_v30  ;;  %1068 = vmatpush.bf16.msrb.mxu2 %v2499_v38  ;;  %v2047_v30 = vld [vmem:[%s3356_s3 + $0x8] sm:$0xf]  ;;  %v2064_v32 = vor.u32 %v2439_v29, %v2063_v28  ;;  %v3416_v38 = vld [vmem:[#allocation7] ss:$0 sm:$0xff]  ;;  %v2396_v14 = vor.u32 %v2521_v10, %v2395_v8 }
  0x71   : > { %988 = vmatmul.bf16.gmra.mxu1 %v2056_v17  ;;  %1427 = vmatpush.bf16.msrb.mxu0 %v2404_v49  ;;  %v2444_v17 = vld [vmem:[%s3356_s3 + $0x64] sm:$0xf]  ;;  %v2363_v49 = vld [vmem:[#allocation8 + $0x48] sm:$0xf] }
  0x72   : > { %1340 = vmatpush.bf16.msrb.mxu3 %v2376_v25  ;;  %v2512_v25 = vld [vmem:[#allocation8 + $0x40] sm:$0xf0] }
  0x74   : > { %1069 = vmatpush.bf16.msrb.mxu2 %v2498_v45 }
  0x78   : > { %1070 = vmatpush.bf16.msrb.mxu2 %v2497_v52  ;;  %v2442_v52 = vld [vmem:[%s3356_s3 + $0x50] sm:$0xf0] }
  0x7c   : > { %1071 = vmatpush.bf16.msrb.mxu2 %v2496_v59 }
  0x7f   : > { %944 = vmatmul.bf16.gmra.mxu2 %v2160_v36  ;;  %904 = vmatmul.bf16.gmra.mxu0 %v2064_v32  ;;  %v2068_v36 = vor.u32 %v2438_v34, %v2065_v35  ;;  %v2383_v32 = vld [vmem:[#allocation8 + $0x68] sm:$0xf]  ;;  %v2518_v34 = vld [vmem:[#allocation8 + $0x70] sm:$0xf0] }
  0x80   : > { %1033 = vmatmul.bf16.gmra.mxu3 %v2164_v37  ;;  %v2048_v37 = vor.u32 %v2434_v33, %v2047_v30  ;;  %v2516_v30 = vld [vmem:[#allocation8 + $0x64] sm:$0xf]  ;;  %v2099_v35 = vld [vmem:[%s3356_s3 + $0x78] sm:$0xf]  ;;  %v2384_v39 = vor.u32 %v2518_v34, %v2383_v32  ;;  %v2449_v32 = vld [vmem:[%s3356_s3 + $0x88] sm:$0xf0] }
  0x81   : > { %993 = vmatmul.bf16.gmra.mxu1 %v2068_v36  ;;  %v2380_v33 = vor.u32 %v2516_v30, %v2377_v31  ;;  %v2448_v36 = vld [vmem:[%s3356_s3 + $0x80] sm:$0xf0]  ;;  %v2360_v30 = vor.u32 %v2512_v25, %v2359_v23  ;;  %v2125_v34 = vld [vmem:[%s3356_s3 + $0xb4] sm:$0xf0]  ;;  %v2455_v23 = vld [vmem:[%s3356_s3 + $0xb8] sm:$0xf0] }
  0x82   : > { %v2100_v40 = vor.u32 %v2448_v36, %v2099_v35 }
  0x8f   : > { %949 = vmatmul.bf16.gmra.mxu2 %v2172_v43 }
  0x90   : > { %1038 = vmatmul.bf16.gmra.mxu3 %v2176_v44 }
  0x9f   : > { %954 = vmatmul.bf16.gmra.mxu2 %v2184_v50  ;;  %v2524_v50 = vld [vmem:[#allocation8 + $0xa0] sm:$0xf0] }
  0xa0   : > { %1043 = vmatmul.bf16.gmra.mxu3 %v2188_v51  ;;  %v2075_v51 = vld [vmem:[%s3356_s3 + $0x48] sm:$0xf]  ;;  %v2408_v54 = vor.u32 %v2524_v50, %v2407_v48  ;;  %v2514_v50 = vld [vmem:[#allocation8 + $0x50] sm:$0xf0] }
  0xa1   : > { %v2076_v55 = vor.u32 %v2442_v52, %v2075_v51  ;;  %v2364_v51 = vor.u32 %v2514_v50, %v2363_v49  ;;  %v2507_v50 = vld [vmem:[#allocation8 + $0x1c] sm:$0xf] }
  0xa2   : > { %1516 = vmatpush.bf16.msrb.mxu1 %v2408_v54 }
  0xa3   : > { %909 = vmatmul.bf16.gmra.mxu0 %v2076_v55  ;;  %1341 = vmatpush.bf16.msrb.mxu3 %v2364_v51  ;;  %v2341_v51 = vld [vmem:[#allocation8 + $0x24] sm:$0xf0] }
  0xa6   : > { %1517 = vmatpush.bf16.msrb.mxu1 %v2396_v14  ;;  %v2352_v14 = vor.u32 %v2511_v13, %v2351_v12  ;;  %v2329_v12 = vld [vmem:[#allocation8 + $0xc] sm:$0xf0]  ;;  %v2335_v13 = vld [vmem:[#allocation8 + $0x8] sm:$0xf] }
  0xa8   : > { %1342 = vmatpush.bf16.msrb.mxu3 %v2352_v14 }
  0xaa   : > { %1518 = vmatpush.bf16.msrb.mxu1 %v2384_v39 }
  0xaf   : > { %959 = vmatmul.bf16.gmra.mxu2 %v2196_v57  ;;  %v2441_v57 = vld [vmem:[%s3356_s3 + $0x4c] sm:$0xf] }
  0xb0   : > { %1048 = vmatmul.bf16.gmra.mxu3 %v2200_v58  ;;  %v2077_v58 = vld [vmem:[%s3356_s3 + $0x54] sm:$0xf0] }
  0xb1   : > { %v2080_v59 = vor.u32 %v2441_v57, %v2077_v58  ;;  %v2365_v57 = vld [vmem:[#allocation8 + $0x54] sm:$0xf0]  ;;  %v2371_v58 = vld [vmem:[#allocation8 + $0x50] sm:$0xf] }
  0xb3   : > { %998 = vmatmul.bf16.gmra.mxu1 %v2080_v59  ;;  %914 = vmatmul.bf16.gmra.mxu0 %v2088_v15  ;;  %v2368_v59 = vor.u32 %v2513_v56, %v2365_v57  ;;  %v2119_v57 = vld [vmem:[%s3356_s3 + $0x98] sm:$0xf] }
  0xbf   : > { %964 = vmatmul.bf16.gmra.mxu2 %v2208_v6  ;;  %v2519_v6 = vld [vmem:[#allocation8 + $0x7c] sm:$0xf] }
  0xc0   : > { %1053 = vmatmul.bf16.gmra.mxu3 %v2212_v7  ;;  %v2389_v7 = vld [vmem:[#allocation8 + $0x84] sm:$0xf0] }
  0xc1   : > { %v2392_v9 = vor.u32 %v2519_v6, %v2389_v7  ;;  %v2450_v6 = vld [vmem:[%s3356_s3 + $0x94] sm:$0xf]  ;;  %v2113_v7 = vld [vmem:[%s3356_s3 + $0x9c] sm:$0xf0] }
  0xc2   : > { %v2116_v8 = vor.u32 %v2450_v6, %v2113_v7 }
  0xc3   : > { %1428 = vmatpush.bf16.msrb.mxu0 %v2392_v9 }
  0xc4   : > { %919 = vmatmul.bf16.gmra.mxu0 %v2100_v40  ;;  %v2339_v40 = vld [vmem:[#allocation8 + $0x18] sm:$0xf] }
  0xc7   : > { %1429 = vmatpush.bf16.msrb.mxu0 %v2380_v33  ;;  %v2453_v33 = vld [vmem:[%s3356_s3 + $0xac] sm:$0xf] }
  0xc8   : > { %v2128_v35 = vor.u32 %v2453_v33, %v2125_v34 }
  0xcb   : > { %1430 = vmatpush.bf16.msrb.mxu0 %v2368_v59 }
  0xcf   : > { %969 = vmatmul.bf16.gmra.mxu2 %v2220_v18  ;;  %v2089_v18 = vld [vmem:[%s3356_s3 + $0x6c] sm:$0xf0] }
  0xd0   : > { %1058 = vmatmul.bf16.gmra.mxu3 %v2224_v19  ;;  %v2092_v19 = vor.u32 %v2444_v17, %v2089_v18 }
  0xd2   : > { %1003 = vmatmul.bf16.gmra.mxu1 %v2092_v19  ;;  %v2510_v19 = vld [vmem:[#allocation8 + $0x34] sm:$0xf] }
  0xdf   : > { %1072 = vmatmul.bf16.vlgmr.msrb.gmra.mxu2 %v2048_v37  ;;  %v2083_v37 = vld [vmem:[%s3356_s3 + $0x50] sm:$0xf] }
  0xe0   : > { %v2084_v48 = vor.u32 %v2443_v41, %v2083_v37  ;;  %v2508_v41 = vld [vmem:[#allocation8 + $0x20] sm:$0xf0] }
  0xe2   : > { %v935_v42 = vpop.f32.mrf.mxu2 }
  0xe3   : > { %v1024_v43 = vpop.f32.mrf.mxu3  ;;  %v936_v44 = vadd.f32 %v3416_v38, %v935_v42  ;;  %v2447_v42 = vld [vmem:[%s3356_s3 + $0x7c] sm:$0xf] }
  0xe5   : > { %v3419_v45 = vadd.f32 %v1024_v43, %v936_v44  ;;  %v2101_v43 = vld [vmem:[%s3356_s3 + $0x84] sm:$0xf0] }
  0xe6   : > { %v2104_v44 = vor.u32 %v2447_v42, %v2101_v43  ;;  %v2340_v42 = vor.u32 %v2508_v41, %v2339_v40 }
  0xe8   : > { %1008 = vmatmul.bf16.gmra.mxu1 %v2104_v44  ;;  %1343 = vmatpush.bf16.msrb.mxu3 %v2340_v42 }
  0xea   : > { %v3427_v60 = vpop.f32.mrf.mxu2 }
  0xeb   : > { %v3429_v61 = vpop.f32.mrf.mxu3 }
  0xef   : > { %1077 = vmatmul.bf16.gmra.mxu2 %v2060_v62  ;;  %v2515_v62 = vld [vmem:[#allocation8 + $0x58] sm:$0xf0] }
  0xf2   : > { %v940_v2 = vpop.f32.mrf.mxu2 }
  0xf3   : > { %v1029_v3 = vpop.f32.mrf.mxu3  ;;  %v941_v4 = vadd.f32 %v3416_v38, %v940_v2  ;;  %v2372_v2 = vor.u32 %v2515_v62, %v2371_v58  ;;  %v2452_v58 = vld [vmem:[%s3356_s3 + $0xa0] sm:$0xf0] }
  0xf5   : > { %v3432_v5 = vadd.f32 %v1029_v3, %v941_v4  ;;  %v2112_v3 = vor.u32 %v2451_v0, %v2111_v63  ;;  %v2446_v4 = vld [vmem:[%s3356_s3 + $0x70] sm:$0xf0]  ;;  %1519 = vmatpush.bf16.msrb.mxu1 %v2372_v2  ;;  %v2120_v63 = vor.u32 %v2452_v58, %v2119_v57  ;;  %v895_v0 = vpop.f32.mrf.mxu0  ;;  %v2327_v2 = vld [vmem:[#allocation8] sm:$0xf] }
  0xf6   : > { %v2096_v11 = vor.u32 %v2446_v4, %v2095_v1  ;;  %v984_v1 = vpop.f32.mrf.mxu1 }
  0xf7   : > { %924 = vmatmul.bf16.gmra.mxu0 %v2112_v3  ;;  %v2505_v3 = vld [vmem:[#allocation8 + $0x8] sm:$0xf0] }
  0xf8   : > { %1013 = vmatmul.bf16.gmra.mxu1 %v2116_v8  ;;  %v2328_v4 = vor.u32 %v2505_v3, %v2327_v2 }
  0xf9   : > { %1520 = vmatpush.bf16.msrb.mxu1 %v2360_v30 }
  0xfa   : > { %v3440_v20 = vpop.f32.mrf.mxu2  ;;  %1344 = vmatpush.bf16.msrb.mxu3 %v2328_v4 }
  0xfb   : > { %v3442_v21 = vpop.f32.mrf.mxu3 }
  0xff   : > { %1082 = vmatmul.bf16.gmra.mxu2 %v2072_v22  ;;  %v2353_v22 = vld [vmem:[#allocation8 + $0x3c] sm:$0xf0] }
 0x100   : > { %v2356_v24 = vor.u32 %v2510_v19, %v2353_v22  ;;  %v897_v19 = vpop.f32.mrf.mxu0  ;;  %v2131_v22 = vld [vmem:[%s3356_s3 + $0xb0] sm:$0xf] }
 0x102   : > { %v945_v26 = vpop.f32.mrf.mxu2  ;;  %1431 = vmatpush.bf16.msrb.mxu0 %v2356_v24  ;;  %v986_v24 = vpop.f32.mrf.mxu1 }
 0x103   : > { %v1034_v27 = vpop.f32.mrf.mxu3  ;;  %v946_v28 = vadd.f32 %v3416_v38, %v945_v26  ;;  %v2123_v26 = vld [vmem:[%s3356_s3 + $0xa8] sm:$0xf] }
 0x105   : > { %v3445_v29 = vadd.f32 %v1034_v27, %v946_v28  ;;  %v2454_v27 = vld [vmem:[%s3356_s3 + $0xb0] sm:$0xf0]  ;;  %v2107_v28 = vld [vmem:[%s3356_s3 + $0x80] sm:$0xf] }
 0x106   : > { %v2124_v31 = vor.u32 %v2454_v27, %v2123_v26  ;;  %v2108_v39 = vor.u32 %v2449_v32, %v2107_v28  ;;  %v2132_v27 = vor.u32 %v2455_v23, %v2131_v22 }
 0x108   : > { %929 = vmatmul.bf16.gmra.mxu0 %v2124_v31  ;;  %1018 = vmatmul.bf16.gmra.mxu1 %v2128_v35  ;;  %v900_v28 = vpop.f32.mrf.mxu0  ;;  %v2143_v35 = vld [vmem:[%s3356_s3 + $0xc8] sm:$0xf] }
 0x10a   : > { %v3453_v46 = vpop.f32.mrf.mxu2  ;;  %v989_v33 = vpop.f32.mrf.mxu1 }
 0x10b   : > { %v3455_v47 = vpop.f32.mrf.mxu3 }
 0x10f   : > { %1087 = vmatmul.bf16.gmra.mxu2 %v2084_v48 }
 0x110   : > { %v902_v41 = vpop.f32.mrf.mxu0 }
 0x112   : > { %v950_v52 = vpop.f32.mrf.mxu2 }
 0x113   : > { %v1039_v53 = vpop.f32.mrf.mxu3  ;;  %v951_v54 = vadd.f32 %v3416_v38, %v950_v52  ;;  %v2347_v52 = vld [vmem:[#allocation8 + $0x20] sm:$0xf] }
 0x115   : > { %v3458_v55 = vadd.f32 %v1039_v53, %v951_v54  ;;  %v2344_v53 = vor.u32 %v2507_v50, %v2341_v51  ;;  %v2509_v54 = vld [vmem:[#allocation8 + $0x28] sm:$0xf0]  ;;  %v898_v51 = vadd.f32 %v3416_v38, %v897_v19 }
 0x116   : > { %v2348_v56 = vor.u32 %v2509_v54, %v2347_v52  ;;  %v2461_v54 = vld [vmem:[%s3356_s3 + $0xe8] sm:$0xf0] }
 0x117   : > { %1432 = vmatpush.bf16.msrb.mxu0 %v2344_v53  ;;  %v2155_v53 = vld [vmem:[%s3356_s3 + $0xe0] sm:$0xf]  ;;  %v987_v57 = vadd.f32 %v986_v24, %v898_v51 }
 0x118   : > { %1521 = vmatpush.bf16.msrb.mxu1 %v2348_v56  ;;  %v905_v50 = vpop.f32.mrf.mxu0  ;;  %v2156_v3 = vor.u32 %v2461_v54, %v2155_v53 }
 0x11a   : > { %v3466_v9 = vpop.f32.mrf.mxu2 }
 0x11b   : > { %v3468_v10 = vpop.f32.mrf.mxu3 }
 0x11f   : > { %1092 = vmatmul.bf16.gmra.mxu2 %v2096_v11  ;;  %v2504_v11 = vld [vmem:[#allocation8 + $0x4] sm:$0xf] }
 0x120   : > { %v2332_v14 = vor.u32 %v2504_v11, %v2329_v12  ;;  %v2167_v12 = vld [vmem:[%s3356_s3 + $0xf8] sm:$0xf] }
 0x122   : > { %v955_v15 = vpop.f32.mrf.mxu2  ;;  %1433 = vmatpush.bf16.msrb.mxu0 %v2332_v14 }
 0x123   : > { %v1044_v16 = vpop.f32.mrf.mxu3  ;;  %v956_v17 = vadd.f32 %v3416_v38, %v955_v15  ;;  %v2506_v15 = vld [vmem:[#allocation8 + $0x10] sm:$0xf0] }
 0x125   : > { %v3471_v18 = vadd.f32 %v1044_v16, %v956_v17  ;;  %v2336_v17 = vor.u32 %v2506_v15, %v2335_v13  ;;  %v2464_v13 = vld [vmem:[%s3356_s3 + $0x100] sm:$0xf0] }
 0x126   : > { %v2168_v23 = vor.u32 %v2464_v13, %v2167_v12 }
 0x127   : > { %1522 = vmatpush.bf16.msrb.mxu1 %v2336_v17 }
 0x12a   : > { %v3479_v36 = vpop.f32.mrf.mxu2 }
 0x12b   : > { %v3481_v37 = vpop.f32.mrf.mxu3 }
 0x12f   : > { %1097 = vmatmul.bf16.gmra.mxu2 %v2108_v39  ;;  %v2458_v39 = vld [vmem:[%s3356_s3 + $0xd0] sm:$0xf0] }
 0x130   : > { %v2144_v42 = vor.u32 %v2458_v39, %v2143_v35  ;;  %v2179_v39 = vld [vmem:[%s3356_s3 + $0x110] sm:$0xf] }
 0x132   : > { %v960_v43 = vpop.f32.mrf.mxu2 }
 0x133   : > { %v1049_v44 = vpop.f32.mrf.mxu3  ;;  %v961_v48 = vadd.f32 %v3416_v38, %v960_v43  ;;  %v991_v43 = vpop.f32.mrf.mxu1 }
 0x135   : > { %v3484_v49 = vadd.f32 %v1049_v44, %v961_v48  ;;  %v896_v48 = vadd.f32 %v3416_v38, %v895_v0 }
 0x137   : > { %v985_v52 = vadd.f32 %v984_v1, %v896_v48  ;;  %v901_v1 = vadd.f32 %v3416_v38, %v900_v28 }
 0x139   : > { %v990_v11 = vadd.f32 %v989_v33, %v901_v1 }
 0x13a   : > { %v3488_v59 = vpop.f32.mrf.mxu2 }
 0x13b   : > { %v3490_v62 = vpop.f32.mrf.mxu3  ;;  %v994_v56 = vpop.f32.mrf.mxu1 }
 0x13f   : > { %1102 = vmatmul.bf16.gmra.mxu2 %v2120_v63 }
 0x142   : > { %v965_v6 = vpop.f32.mrf.mxu2 }
 0x143   : > { %v1054_v7 = vpop.f32.mrf.mxu3  ;;  %v966_v8 = vadd.f32 %v3416_v38, %v965_v6  ;;  %v907_v6 = vpop.f32.mrf.mxu0 }
 0x145   : > { %v3493_v16 = vadd.f32 %v1054_v7, %v966_v8  ;;  %v996_v7 = vpop.f32.mrf.mxu1  ;;  %v903_v8 = vadd.f32 %v3416_v38, %v902_v41  ;;  %v2467_v41 = vld [vmem:[%s3356_s3 + $0x118] sm:$0xf0] }
 0x146   : > { %v2180_v51 = vor.u32 %v2467_v41, %v2179_v39 }
 0x147   : > { %v992_v15 = vadd.f32 %v991_v43, %v903_v8 }
 0x14a   : > { %v3497_v25 = vpop.f32.mrf.mxu2 }
 0x14b   : > { %v3499_v26 = vpop.f32.mrf.mxu3  ;;  %v910_v14 = vpop.f32.mrf.mxu0 }
 0x14d   : > { %v999_v24 = vpop.f32.mrf.mxu1 }
 0x14f   : > { %1107 = vmatmul.bf16.gmra.mxu2 %v2132_v27 }
 0x152   : > { %v970_v30 = vpop.f32.mrf.mxu2 }
 0x153   : > { %v1059_v31 = vpop.f32.mrf.mxu3  ;;  %v971_v32 = vadd.f32 %v3416_v38, %v970_v30  ;;  %v912_v30 = vpop.f32.mrf.mxu0 }
 0x155   : > { %v3502_v34 = vadd.f32 %v1059_v31, %v971_v32  ;;  %v906_v31 = vadd.f32 %v3416_v38, %v905_v50  ;;  %v908_v32 = vadd.f32 %v3416_v38, %v907_v6  ;;  %v1001_v33 = vpop.f32.mrf.mxu1 }
 0x157   : > { %v995_v35 = vadd.f32 %v994_v56, %v906_v31  ;;  %v913_v56 = vadd.f32 %v3416_v38, %v912_v30 }
 0x15a   : > { %v3506_v40 = vpop.f32.mrf.mxu2 }
 0x15d   : > { %v1004_v50 = vpop.f32.mrf.mxu1 }
 0x15f   : > { %1112 = vmatmul.bf16.gmra.mxu2 %v2144_v42  ;;  %v997_v42 = vadd.f32 %v996_v7, %v908_v32 }
 0x162   : > { %v1073_v44 = vpop.f32.mrf.mxu2 }
 0x163   : > { %v1074_v63 = vadd.f32 %v1073_v44, %v985_v52  ;;  %v915_v52 = vpop.f32.mrf.mxu0 }
 0x16a   : > { %v1075_v58 = vpop.f32.mrf.mxu2 }
 0x16b   : > { %v1076_v2 = vadd.f32 %v1075_v58, %v987_v57  ;;  %v911_v57 = vadd.f32 %v3416_v38, %v910_v14  ;;  %v917_v58 = vpop.f32.mrf.mxu0  ;;  %v916_v14 = vadd.f32 %v3416_v38, %v915_v52  ;;  %v2476_v52 = vld [vmem:[%s3356_s3 + $0x160] sm:$0xf0] }
 0x16d   : > { %v1153_v4 = vpack.c.bf16 %v1076_v2, %v1074_v63  ;;  %v1000_v63 = vadd.f32 %v999_v24, %v911_v57  ;;  %v2191_v2 = vld [vmem:[%s3356_s3 + $0x128] sm:$0xf] }
 0x16f   : > { %1117 = vmatmul.bf16.gmra.mxu2 %v2156_v3  ;;  %1345 = vmatmul.bf16.vlgmr.msrb.gmra.mxu3 %v1153_v4  ;;  %v2470_v3 = vld [vmem:[%s3356_s3 + $0x130] sm:$0xf0] }
 0x170   : > { %1434 = vmatmul.bf16.vlgmr.msrb.gmra.mxu0 %v1153_v4  ;;  %1523 = vmatmul.bf16.vlgmr.msrb.gmra.mxu1 %v1153_v4  ;;  %v1002_v4 = vadd.f32 %v1001_v33, %v913_v56  ;;  %v2192_v8 = vor.u32 %v2470_v3, %v2191_v2 }
 0x172   : > { %v1078_v0 = vpop.f32.mrf.mxu2 }
 0x173   : > { %v1079_v19 = vadd.f32 %v1078_v0, %v990_v11  ;;  %v1006_v0 = vpop.f32.mrf.mxu1  ;;  %v920_v12 = vpop.f32.mrf.mxu0 }
 0x174   : > { %v921_v41 = vadd.f32 %v3416_v38, %v920_v12 }
 0x17a   : > { %v1080_v17 = vpop.f32.mrf.mxu2 }
 0x17b   : > { %v1081_v22 = vadd.f32 %v1080_v17, %v992_v15  ;;  %v1009_v15 = vpop.f32.mrf.mxu1  ;;  %v918_v17 = vadd.f32 %v3416_v38, %v917_v58 }
 0x17d   : > { %v1154_v27 = vpack.c.bf16 %v1081_v22, %v1079_v19  ;;  %v1005_v19 = vadd.f32 %v1004_v50, %v916_v14  ;;  %v2203_v22 = vld [vmem:[%s3356_s3 + $0x140] sm:$0xf]  ;;  %v1007_v24 = vadd.f32 %v1006_v0, %v918_v17 }
 0x17f   : > { %1122 = vmatmul.bf16.gmra.mxu2 %v2168_v23  ;;  %1350 = vmatmul.bf16.gmra.mxu3 %v1154_v27  ;;  %v2473_v23 = vld [vmem:[%s3356_s3 + $0x148] sm:$0xf0] }
 0x180   : > { %1439 = vmatmul.bf16.gmra.mxu0 %v1154_v27  ;;  %1528 = vmatmul.bf16.gmra.mxu1 %v1154_v27  ;;  %v2204_v32 = vor.u32 %v2473_v23, %v2203_v22 }
 0x182   : > { %v1083_v28 = vpop.f32.mrf.mxu2 }
 0x183   : > { %v1084_v44 = vadd.f32 %v1083_v28, %v995_v35  ;;  %v922_v28 = vpop.f32.mrf.mxu0  ;;  %v1011_v35 = vpop.f32.mrf.mxu1 }
 0x18a   : > { %v1085_v43 = vpop.f32.mrf.mxu2 }
 0x18b   : > { %v1086_v48 = vadd.f32 %v1085_v43, %v997_v42  ;;  %v925_v42 = vpop.f32.mrf.mxu0  ;;  %v923_v43 = vadd.f32 %v3416_v38, %v922_v28 }
 0x18d   : > { %v1155_v53 = vpack.c.bf16 %v1086_v48, %v1084_v44  ;;  %v1010_v44 = vadd.f32 %v1009_v15, %v921_v41  ;;  %v1014_v48 = vpop.f32.mrf.mxu1 }
 0x18f   : > { %1127 = vmatmul.bf16.gmra.mxu2 %v2180_v51  ;;  %1355 = vmatmul.bf16.gmra.mxu3 %v1155_v53  ;;  %v2215_v51 = vld [vmem:[%s3356_s3 + $0x158] sm:$0xf] }
 0x190   : > { %1444 = vmatmul.bf16.gmra.mxu0 %v1155_v53  ;;  %1533 = vmatmul.bf16.gmra.mxu1 %v1155_v53  ;;  %v1012_v53 = vadd.f32 %v1011_v35, %v923_v43  ;;  %v2216_v56 = vor.u32 %v2476_v52, %v2215_v51 }
 0x192   : > { %v1088_v54 = vpop.f32.mrf.mxu2 }
 0x193   : > { %v1089_v7 = vadd.f32 %v1088_v54, %v1000_v63  ;;  %v927_v63 = vpop.f32.mrf.mxu0 }
 0x195   : > { %v1016_v2 = vpop.f32.mrf.mxu1 }
 0x19a   : > { %v1090_v6 = vpop.f32.mrf.mxu2 }
 0x19b   : > { %v1091_v1 = vadd.f32 %v1090_v6, %v1002_v4  ;;  %v926_v4 = vadd.f32 %v3416_v38, %v925_v42  ;;  %v928_v6 = vadd.f32 %v3416_v38, %v927_v63  ;;  %v938_v42 = vadd.f32 %v3416_v38, %v3427_v60 }
 0x19d   : > { %v1156_v11 = vpack.c.bf16 %v1091_v1, %v1089_v7  ;;  %v1015_v0 = vadd.f32 %v1014_v48, %v926_v4  ;;  %v930_v7 = vpop.f32.mrf.mxu0  ;;  %v2227_v1 = vld [vmem:[%s3356_s3 + $0x170] sm:$0xf]  ;;  %v1019_v17 = vpop.f32.mrf.mxu1  ;;  %v1027_v43 = vadd.f32 %v3429_v61, %v938_v42 }
 0x19f   : > { %1132 = vmatmul.bf16.gmra.mxu2 %v2192_v8  ;;  %1360 = vmatmul.bf16.gmra.mxu3 %v1156_v11  ;;  %v2479_v8 = vld [vmem:[%s3356_s3 + $0x178] sm:$0xf0] }
 0x1a0   : > { %1449 = vmatmul.bf16.gmra.mxu0 %v1156_v11  ;;  %1538 = vmatmul.bf16.gmra.mxu1 %v1156_v11  ;;  %v1017_v11 = vadd.f32 %v1016_v2, %v928_v6  ;;  %v2228_v15 = vor.u32 %v2479_v8, %v2227_v1 }
 0x1a2   : > { %v1093_v13 = vpop.f32.mrf.mxu2 }
 0x1a3   : > { %v1094_v30 = vadd.f32 %v1093_v13, %v1005_v19 }
 0x1a5   : > { %v932_v22 = vpop.f32.mrf.mxu0  ;;  %v1021_v28 = vpop.f32.mrf.mxu1 }
 0x1aa   : > { %v1095_v27 = vpop.f32.mrf.mxu2 }
 0x1ab   : > { %v1096_v31 = vadd.f32 %v1095_v27, %v1007_v24  ;;  %v931_v24 = vadd.f32 %v3416_v38, %v930_v7  ;;  %v933_v27 = vadd.f32 %v3416_v38, %v932_v22 }
 0x1ad   : > { %v1157_v33 = vpack.c.bf16 %v1096_v31, %v1094_v30  ;;  %v1020_v30 = vadd.f32 %v1019_v17, %v931_v24  ;;  %v1022_v31 = vadd.f32 %v1021_v28, %v933_v27  ;;  %v948_v27 = vadd.f32 %v3416_v38, %v3453_v46 }
 0x1af   : > { %1137 = vmatmul.bf16.gmra.mxu2 %v2204_v32  ;;  %1365 = vmatmul.bf16.gmra.mxu3 %v1157_v33  ;;  %v1037_v42 = vadd.f32 %v3455_v47, %v948_v27 }
 0x1b0   : > { %1454 = vmatmul.bf16.gmra.mxu0 %v1157_v33  ;;  %1543 = vmatmul.bf16.gmra.mxu1 %v1157_v33 }
 0x1b2   : > { %v1098_v39 = vpop.f32.mrf.mxu2 }
 0x1b3   : > { %v1099_v54 = vadd.f32 %v1098_v39, %v1010_v44  ;;  %v3541_v44 = vpop.f32.mrf.mxu3 }
 0x1ba   : > { %v1100_v50 = vpop.f32.mrf.mxu2 }
 0x1bb   : > { %v1101_v57 = vadd.f32 %v1100_v50, %v1012_v53 }
 0x1bd   : > { %v1158_v58 = vpack.c.bf16 %v1101_v57, %v1099_v54  ;;  %v1201_v57 = vld [vmem:[%s3844_s4] sm:$0x7] }
 0x1be   : > { %v3547_v60 = vperm.slane %v1201_v57, 1  ;;  %v3549_v61 = vperm.slane %v1201_v57, 2  ;;  %v3558_v7 = vperm.slane %v1201_v57, 0 }
 0x1bf   : > { %1142 = vmatmul.bf16.gmra.mxu2 %v2216_v56  ;;  %1370 = vmatmul.bf16.gmra.mxu3 %v1158_v58 }
 0x1c0   : > { %1459 = vmatmul.bf16.gmra.mxu0 %v1158_v58  ;;  %1548 = vmatmul.bf16.gmra.mxu1 %v1158_v58 }
 0x1c2   : > { %v1103_v3 = vpop.f32.mrf.mxu2 }
 0x1c3   : > { %v1104_v13 = vadd.f32 %v1103_v3, %v1015_v0 }
 0x1ca   : > { %v1105_v12 = vpop.f32.mrf.mxu2 }
 0x1cb   : > { %v1106_v14 = vadd.f32 %v1105_v12, %v1017_v11 }
 0x1cd   : > { %v1159_v19 = vpack.c.bf16 %v1106_v14, %v1104_v13 }
 0x1cf   : > { %1147 = vmatmul.bf16.gmra.mxu2 %v2228_v15  ;;  %1375 = vmatmul.bf16.gmra.mxu3 %v1159_v19 }
 0x1d0   : > { %1464 = vmatmul.bf16.gmra.mxu0 %v1159_v19  ;;  %1553 = vmatmul.bf16.gmra.mxu1 %v1159_v19 }
 0x1d2   : > { %v1108_v23 = vpop.f32.mrf.mxu2 }
 0x1d3   : > { %v1109_v33 = vadd.f32 %v1108_v23, %v1020_v30 }
 0x1da   : > { %v1110_v32 = vpop.f32.mrf.mxu2 }
 0x1db   : > { %v1111_v35 = vadd.f32 %v1110_v32, %v1022_v31 }
 0x1dd   : > { %v1160_v39 = vpack.c.bf16 %v1111_v35, %v1109_v33 }
 0x1df   : > { %1380 = vmatmul.bf16.gmra.mxu3 %v1160_v39 }
 0x1e0   : > { %1469 = vmatmul.bf16.gmra.mxu0 %v1160_v39  ;;  %1558 = vmatmul.bf16.gmra.mxu1 %v1160_v39 }
 0x1e2   : > { %v1113_v41 = vpop.f32.mrf.mxu2 }
 0x1e3   : > { %v1114_v51 = vadd.f32 %v1113_v41, %v3419_v45  ;;  %v943_v45 = vadd.f32 %v3416_v38, %v3440_v20 }
 0x1e5   : > { %v1032_v11 = vadd.f32 %v3442_v21, %v943_v45 }
 0x1ea   : > { %v1115_v48 = vpop.f32.mrf.mxu2 }
 0x1eb   : > { %v1116_v52 = vadd.f32 %v1115_v48, %v1027_v43 }
 0x1ed   : > { %v1161_v53 = vpack.c.bf16 %v1116_v52, %v1114_v51  ;;  %v1435_v50 = vpop.f32.mrf.mxu0  ;;  %v1524_v54 = vpop.f32.mrf.mxu1 }
 0x1ee   : > { %v1436_v3 = vadd.f32 %v1435_v50, %v3547_v60  ;;  %v1525_v4 = vadd.f32 %v1524_v54, %v3549_v61 }
 0x1ef   : > { %1385 = vmatmul.bf16.gmra.mxu3 %v1161_v53 }
 0x1f0   : > { %1474 = vmatmul.bf16.gmra.mxu0 %v1161_v53  ;;  %1563 = vmatmul.bf16.gmra.mxu1 %v1161_v53 }
 0x1f2   : > { %v1118_v56 = vpop.f32.mrf.mxu2  ;;  %v1346_v58 = vpop.f32.mrf.mxu3 }
 0x1f3   : > { %v1119_v13 = vadd.f32 %v1118_v56, %v3432_v5  ;;  %v1347_v14 = vadd.f32 %v1346_v58, %v3558_v7 }
 0x1f5   : > { %v1437_v63 = vpop.f32.mrf.mxu0  ;;  %v1526_v2 = vpop.f32.mrf.mxu1 }
 0x1f6   : > { %v1438_v6 = vadd.f32 %v1437_v63, %v3547_v60  ;;  %v1527_v0 = vadd.f32 %v1526_v2, %v3549_v61 }
 0x1f8   : > { %v2614_v1 = vpack.c.bf16 %v1438_v6, %v1436_v3  ;;  %v2694_v8 = vpack.c.bf16 %v1527_v0, %v1525_v4 }
 0x1fa   : > { %2615 = vst [vmem:[%s3561_s11] sm:$0xff] %v2614_v1   ;;  %v1120_v20 = vpop.f32.mrf.mxu2  ;;  %v1348_v12 = vpop.f32.mrf.mxu3 }
 0x1fb   : > { %2695 = vst [vmem:[%s3566_s14] sm:$0xff] %v2694_v8   ;;  %v1121_v15 = vadd.f32 %v1120_v20, %v1032_v11  ;;  %v1349_v17 = vadd.f32 %v1348_v12, %v3558_v7 }
 0x1fd   : > { %v1162_v19 = vpack.c.bf16 %v1121_v15, %v1119_v13  ;;  %v2534_v22 = vpack.c.bf16 %v1349_v17, %v1347_v14  ;;  %v1440_v21 = vpop.f32.mrf.mxu0  ;;  %v1529_v23 = vpop.f32.mrf.mxu1 }
 0x1fe   : > { %v1441_v31 = vadd.f32 %v1440_v21, %v3547_v60  ;;  %v1530_v32 = vadd.f32 %v1529_v23, %v3549_v61 }
 0x1ff   : > { %2535 = vst [vmem:[%s3570_s16] sm:$0xff] %v2534_v22   ;;  %1390 = vmatmul.bf16.gmra.mxu3 %v1162_v19 }
 0x200   : > { %1479 = vmatmul.bf16.gmra.mxu0 %v1162_v19  ;;  %1568 = vmatmul.bf16.gmra.mxu1 %v1162_v19 }
 0x202   : > { %v1123_v5 = vpop.f32.mrf.mxu2  ;;  %v1351_v24 = vpop.f32.mrf.mxu3 }
 0x203   : > { %v1124_v46 = vadd.f32 %v1123_v5, %v3445_v29  ;;  %v1352_v51 = vadd.f32 %v1351_v24, %v3558_v7  ;;  %v953_v29 = vadd.f32 %v3416_v38, %v3466_v9 }
 0x205   : > { %v1442_v28 = vpop.f32.mrf.mxu0  ;;  %v1531_v30 = vpop.f32.mrf.mxu1  ;;  %v1042_v8 = vadd.f32 %v3468_v10, %v953_v29 }
 0x206   : > { %v1443_v33 = vadd.f32 %v1442_v28, %v3547_v60  ;;  %v1532_v35 = vadd.f32 %v1531_v30, %v3549_v61 }
 0x208   : > { %v2619_v39 = vpack.c.bf16 %v1443_v33, %v1441_v31  ;;  %v2699_v41 = vpack.c.bf16 %v1532_v35, %v1530_v32 }
 0x20a   : > { %2786 = vst [vmem:[%s3561_s11 + $0x8] sm:$0xff] %v2619_v39   ;;  %v1125_v43 = vpop.f32.mrf.mxu2  ;;  %v1353_v48 = vpop.f32.mrf.mxu3 }
 0x20b   : > { %2801 = vst [vmem:[%s3566_s14 + $0x8] sm:$0xff] %v2699_v41   ;;  %v1126_v52 = vadd.f32 %v1125_v43, %v1037_v42  ;;  %v1354_v53 = vadd.f32 %v1353_v48, %v3558_v7 }
 0x20d   : > { %v1163_v50 = vpack.c.bf16 %v1126_v52, %v1124_v46  ;;  %v2539_v54 = vpack.c.bf16 %v1354_v53, %v1352_v51  ;;  %v1445_v57 = vpop.f32.mrf.mxu0  ;;  %v1534_v56 = vpop.f32.mrf.mxu1 }
 0x20e   : > { %v1446_v2 = vadd.f32 %v1445_v57, %v3547_v60  ;;  %v1535_v3 = vadd.f32 %v1534_v56, %v3549_v61 }
 0x20f   : > { %2771 = vst [vmem:[%s3570_s16 + $0x8] sm:$0xff] %v2539_v54   ;;  %1395 = vmatmul.bf16.gmra.mxu3 %v1163_v50 }
 0x210   : > { %1484 = vmatmul.bf16.gmra.mxu0 %v1163_v50  ;;  %1573 = vmatmul.bf16.gmra.mxu1 %v1163_v50 }
 0x212   : > { %v1128_v47 = vpop.f32.mrf.mxu2  ;;  %v1356_v58 = vpop.f32.mrf.mxu3 }
 0x213   : > { %v1129_v9 = vadd.f32 %v1128_v47, %v3458_v55  ;;  %v1357_v12 = vadd.f32 %v1356_v58, %v3558_v7  ;;  %v958_v55 = vadd.f32 %v3416_v38, %v3479_v36 }
 0x215   : > { %v1447_v45 = vpop.f32.mrf.mxu0  ;;  %v1536_v63 = vpop.f32.mrf.mxu1  ;;  %v1047_v33 = vadd.f32 %v3481_v37, %v958_v55 }
 0x216   : > { %v1448_v4 = vadd.f32 %v1447_v45, %v3547_v60  ;;  %v1537_v6 = vadd.f32 %v1536_v63, %v3549_v61 }
 0x218   : > { %v2624_v0 = vpack.c.bf16 %v1448_v4, %v1446_v2  ;;  %v2704_v1 = vpack.c.bf16 %v1537_v6, %v1535_v3 }
 0x21a   : > { %2787 = vst [vmem:[%s3561_s11 + $0x10] sm:$0xff] %v2624_v0   ;;  %v1130_v11 = vpop.f32.mrf.mxu2  ;;  %v1358_v20 = vpop.f32.mrf.mxu3 }
 0x21b   : > { %2802 = vst [vmem:[%s3566_s14 + $0x10] sm:$0xff] %v2704_v1   ;;  %v1131_v13 = vadd.f32 %v1130_v11, %v1042_v8  ;;  %v1359_v14 = vadd.f32 %v1358_v20, %v3558_v7 }
 0x21d   : > { %v1164_v15 = vpack.c.bf16 %v1131_v13, %v1129_v9  ;;  %v2544_v17 = vpack.c.bf16 %v1359_v14, %v1357_v12  ;;  %v1450_v19 = vpop.f32.mrf.mxu0  ;;  %v1539_v22 = vpop.f32.mrf.mxu1  ;;  %v2929_v9 = vld [vmem:[#allocation7] ss:$0 sm:$0xff] }
 0x21e   : > { %v1451_v24 = vadd.f32 %v1450_v19, %v3547_v60  ;;  %v1540_v27 = vadd.f32 %v1539_v22, %v3549_v61 }
 0x21f   : > { %2772 = vst [vmem:[%s3570_s16 + $0x10] sm:$0xff] %v2544_v17   ;;  %1400 = vmatmul.bf16.gmra.mxu3 %v1164_v15 }
 0x220   : > { %1489 = vmatmul.bf16.gmra.mxu0 %v1164_v15  ;;  %1578 = vmatmul.bf16.gmra.mxu1 %v1164_v15 }
 0x222   : > { %v1133_v10 = vpop.f32.mrf.mxu2  ;;  %v1361_v21 = vpop.f32.mrf.mxu3 }
 0x223   : > { %v1134_v36 = vadd.f32 %v1133_v10, %v3471_v18  ;;  %v1362_v41 = vadd.f32 %v1361_v21, %v3558_v7  ;;  %v963_v18 = vadd.f32 %v3416_v38, %v3488_v59 }
 0x225   : > { %v1452_v23 = vpop.f32.mrf.mxu0  ;;  %v1541_v5 = vpop.f32.mrf.mxu1  ;;  %v1052_v63 = vadd.f32 %v3490_v62, %v963_v18 }
 0x226   : > { %v1453_v28 = vadd.f32 %v1452_v23, %v3547_v60  ;;  %v1542_v30 = vadd.f32 %v1541_v5, %v3549_v61 }
 0x228   : > { %v2629_v31 = vpack.c.bf16 %v1453_v28, %v1451_v24  ;;  %v2709_v32 = vpack.c.bf16 %v1542_v30, %v1540_v27 }
 0x22a   : > { %2788 = vst [vmem:[%s3561_s11 + $0x18] sm:$0xff] %v2629_v31   ;;  %v1135_v35 = vpop.f32.mrf.mxu2  ;;  %v1363_v39 = vpop.f32.mrf.mxu3 }
 0x22b   : > { %2803 = vst [vmem:[%s3566_s14 + $0x18] sm:$0xff] %v2709_v32   ;;  %v1136_v42 = vadd.f32 %v1135_v35, %v1047_v33  ;;  %v1364_v43 = vadd.f32 %v1363_v39, %v3558_v7 }
 0x22d   : > { %v1165_v48 = vpack.c.bf16 %v1136_v42, %v1134_v36  ;;  %v2549_v46 = vpack.c.bf16 %v1364_v43, %v1362_v41  ;;  %v1455_v51 = vpop.f32.mrf.mxu0  ;;  %v1544_v52 = vpop.f32.mrf.mxu1 }
 0x22e   : > { %v1456_v57 = vadd.f32 %v1455_v51, %v3547_v60  ;;  %v1545_v56 = vadd.f32 %v1544_v52, %v3549_v61 }
 0x22f   : > { %2773 = vst [vmem:[%s3570_s16 + $0x18] sm:$0xff] %v2549_v46   ;;  %1405 = vmatmul.bf16.gmra.mxu3 %v1165_v48 }
 0x230   : > { %1494 = vmatmul.bf16.gmra.mxu0 %v1165_v48  ;;  %1583 = vmatmul.bf16.gmra.mxu1 %v1165_v48 }
 0x232   : > { %v1138_v37 = vpop.f32.mrf.mxu2  ;;  %v1366_v53 = vpop.f32.mrf.mxu3 }
 0x233   : > { %v1139_v38 = vadd.f32 %v1138_v37, %v3484_v49  ;;  %v1367_v59 = vadd.f32 %v1366_v53, %v3558_v7  ;;  %v968_v49 = vadd.f32 %v2929_v9, %v3497_v25 }
 0x235   : > { %v1457_v50 = vpop.f32.mrf.mxu0  ;;  %v1546_v54 = vpop.f32.mrf.mxu1  ;;  %v1057_v21 = vadd.f32 %v3499_v26, %v968_v49 }
 0x236   : > { %v1458_v47 = vadd.f32 %v1457_v50, %v3547_v60  ;;  %v1547_v58 = vadd.f32 %v1546_v54, %v3549_v61 }
 0x238   : > { %v2634_v29 = vpack.c.bf16 %v1458_v47, %v1456_v57  ;;  %v2714_v45 = vpack.c.bf16 %v1547_v58, %v1545_v56 }
 0x23a   : > { %2789 = vst [vmem:[%s3561_s11 + $0x20] sm:$0xff] %v2634_v29   ;;  %v1140_v2 = vpop.f32.mrf.mxu2  ;;  %v1368_v3 = vpop.f32.mrf.mxu3 }
 0x23b   : > { %2804 = vst [vmem:[%s3566_s14 + $0x20] sm:$0xff] %v2714_v45   ;;  %v1141_v4 = vadd.f32 %v1140_v2, %v1052_v63  ;;  %v1369_v6 = vadd.f32 %v1368_v3, %v3558_v7 }
 0x23d   : > { %v1166_v0 = vpack.c.bf16 %v1141_v4, %v1139_v38  ;;  %v2554_v1 = vpack.c.bf16 %v1369_v6, %v1367_v59  ;;  %v1460_v8 = vpop.f32.mrf.mxu0  ;;  %v1549_v11 = vpop.f32.mrf.mxu1 }
 0x23e   : > { %v1461_v14 = vadd.f32 %v1460_v8, %v3547_v60  ;;  %v1550_v15 = vadd.f32 %v1549_v11, %v3549_v61 }
 0x23f   : > { %2774 = vst [vmem:[%s3570_s16 + $0x20] sm:$0xff] %v2554_v1   ;;  %1410 = vmatmul.bf16.gmra.mxu3 %v1166_v0 }
 0x240   : > { %1499 = vmatmul.bf16.gmra.mxu0 %v1166_v0  ;;  %1588 = vmatmul.bf16.gmra.mxu1 %v1166_v0 }
 0x242   : > { %v1143_v62 = vpop.f32.mrf.mxu2  ;;  %v1371_v20 = vpop.f32.mrf.mxu3 }
 0x243   : > { %v1144_v25 = vadd.f32 %v1143_v62, %v3493_v16  ;;  %v1372_v5 = vadd.f32 %v1371_v20, %v3558_v7  ;;  %v973_v16 = vadd.f32 %v2929_v9, %v3506_v40 }
 0x245   : > { %v1462_v12 = vpop.f32.mrf.mxu0  ;;  %v1551_v13 = vpop.f32.mrf.mxu1  ;;  %v1062_v51 = vadd.f32 %v3541_v44, %v973_v16 }
 0x246   : > { %v1463_v17 = vadd.f32 %v1462_v12, %v3547_v60  ;;  %v1552_v19 = vadd.f32 %v1551_v13, %v3549_v61 }
 0x248   : > { %v2639_v22 = vpack.c.bf16 %v1463_v17, %v1461_v14  ;;  %v2719_v10 = vpack.c.bf16 %v1552_v19, %v1550_v15 }
 0x24a   : > { %2790 = vst [vmem:[%s3561_s11 + $0x28] sm:$0xff] %v2639_v22   ;;  %v1145_v55 = vpop.f32.mrf.mxu2  ;;  %v1373_v23 = vpop.f32.mrf.mxu3 }
 0x24b   : > { %2805 = vst [vmem:[%s3566_s14 + $0x28] sm:$0xff] %v2719_v10   ;;  %v1146_v24 = vadd.f32 %v1145_v55, %v1057_v21  ;;  %v1374_v27 = vadd.f32 %v1373_v23, %v3558_v7 }
 0x24d   : > { %v1167_v28 = vpack.c.bf16 %v1146_v24, %v1144_v25  ;;  %v2559_v30 = vpack.c.bf16 %v1374_v27, %v1372_v5  ;;  %v1465_v31 = vpop.f32.mrf.mxu0  ;;  %v1554_v32 = vpop.f32.mrf.mxu1 }
 0x24e   : > { %v1466_v36 = vadd.f32 %v1465_v31, %v3547_v60  ;;  %v1555_v41 = vadd.f32 %v1554_v32, %v3549_v61 }
 0x24f   : > { %2775 = vst [vmem:[%s3570_s16 + $0x28] sm:$0xff] %v2559_v30   ;;  %1415 = vmatmul.bf16.gmra.mxu3 %v1167_v28 }
 0x250   : > { %1504 = vmatmul.bf16.gmra.mxu0 %v1167_v28  ;;  %1593 = vmatmul.bf16.gmra.mxu1 %v1167_v28 }
 0x252   : > { %v1148_v26 = vpop.f32.mrf.mxu2  ;;  %v1376_v33 = vpop.f32.mrf.mxu3 }
 0x253   : > { %v1149_v40 = vadd.f32 %v1148_v26, %v3502_v34  ;;  %v1377_v53 = vadd.f32 %v1376_v33, %v3558_v7 }
 0x255   : > { %v1467_v35 = vpop.f32.mrf.mxu0  ;;  %v1556_v39 = vpop.f32.mrf.mxu1 }
 0x256   : > { %v1468_v42 = vadd.f32 %v1467_v35, %v3547_v60  ;;  %v1557_v43 = vadd.f32 %v1556_v39, %v3549_v61 }
 0x258   : > { %v2644_v48 = vpack.c.bf16 %v1468_v42, %v1466_v36  ;;  %v2724_v46 = vpack.c.bf16 %v1557_v43, %v1555_v41 }
 0x25a   : > { %2791 = vst [vmem:[%s3561_s11 + $0x30] sm:$0xff] %v2644_v48   ;;  %v1150_v52 = vpop.f32.mrf.mxu2  ;;  %v1378_v37 = vpop.f32.mrf.mxu3 }
 0x25b   : > { %2806 = vst [vmem:[%s3566_s14 + $0x30] sm:$0xff] %v2724_v46   ;;  %v1151_v18 = vadd.f32 %v1150_v52, %v1062_v51  ;;  %v1379_v50 = vadd.f32 %v1378_v37, %v3558_v7 }
 0x25d   : > { %v1168_v54 = vpack.c.bf16 %v1151_v18, %v1149_v40  ;;  %v2564_v57 = vpack.c.bf16 %v1379_v50, %v1377_v53  ;;  %v1470_v56 = vpop.f32.mrf.mxu0  ;;  %v1559_v47 = vpop.f32.mrf.mxu1 }
 0x25e   : > { %v1471_v29 = vadd.f32 %v1470_v56, %v3547_v60  ;;  %v1560_v45 = vadd.f32 %v1559_v47, %v3549_v61 }
 0x25f   : > { %2776 = vst [vmem:[%s3570_s16 + $0x30] sm:$0xff] %v2564_v57   ;;  %1420 = vmatmul.bf16.gmra.mxu3 %v1168_v54 }
 0x260   : > { %1509 = vmatmul.bf16.gmra.mxu0 %v1168_v54  ;;  %1598 = vmatmul.bf16.gmra.mxu1 %v1168_v54 }
 0x262   : > { %v1381_v44 = vpop.f32.mrf.mxu3 }
 0x263   : > { %v1382_v4 = vadd.f32 %v1381_v44, %v3558_v7 }
 0x265   : > { %v1472_v58 = vpop.f32.mrf.mxu0  ;;  %v1561_v34 = vpop.f32.mrf.mxu1 }
 0x266   : > { %v1473_v63 = vadd.f32 %v1472_v58, %v3547_v60  ;;  %v1562_v2 = vadd.f32 %v1561_v34, %v3549_v61 }
 0x268   : > { %v2649_v3 = vpack.c.bf16 %v1473_v63, %v1471_v29  ;;  %v2729_v38 = vpack.c.bf16 %v1562_v2, %v1560_v45 }
 0x26a   : > { %2792 = vst [vmem:[%s3561_s11 + $0x38] sm:$0xff] %v2649_v3   ;;  %v1383_v59 = vpop.f32.mrf.mxu3 }
 0x26b   : > { %2807 = vst [vmem:[%s3566_s14 + $0x38] sm:$0xff] %v2729_v38   ;;  %v1384_v6 = vadd.f32 %v1383_v59, %v3558_v7 }
 0x26d   : > { %v2569_v0 = vpack.c.bf16 %v1384_v6, %v1382_v4  ;;  %v1475_v1 = vpop.f32.mrf.mxu0  ;;  %v1564_v8 = vpop.f32.mrf.mxu1 }
 0x26e   : > { %v1476_v9 = vadd.f32 %v1475_v1, %v3547_v60  ;;  %v1565_v49 = vadd.f32 %v1564_v8, %v3549_v61 }
 0x26f   : > { %2777 = vst [vmem:[%s3570_s16 + $0x38] sm:$0xff] %v2569_v0  }
 0x272   : > { %v1386_v11 = vpop.f32.mrf.mxu3 }
 0x273   : > { %v1387_v19 = vadd.f32 %v1386_v11, %v3558_v7 }
 0x275   : > { %v1477_v62 = vpop.f32.mrf.mxu0  ;;  %v1566_v20 = vpop.f32.mrf.mxu1 }
 0x276   : > { %v1478_v12 = vadd.f32 %v1477_v62, %v3547_v60  ;;  %v1567_v13 = vadd.f32 %v1566_v20, %v3549_v61 }
 0x278   : > { %v2654_v14 = vpack.c.bf16 %v1478_v12, %v1476_v9  ;;  %v2734_v15 = vpack.c.bf16 %v1567_v13, %v1565_v49 }
 0x27a   : > { %2793 = vst [vmem:[%s3561_s11 + $0x40] sm:$0xff] %v2654_v14   ;;  %v1388_v17 = vpop.f32.mrf.mxu3 }
 0x27b   : > { %2808 = vst [vmem:[%s3566_s14 + $0x40] sm:$0xff] %v2734_v15   ;;  %v1389_v22 = vadd.f32 %v1388_v17, %v3558_v7 }
 0x27d   : > { %v2574_v10 = vpack.c.bf16 %v1389_v22, %v1387_v19  ;;  %v1480_v21 = vpop.f32.mrf.mxu0  ;;  %v1569_v55 = vpop.f32.mrf.mxu1 }
 0x27e   : > { %v1481_v24 = vadd.f32 %v1480_v21, %v3547_v60  ;;  %v1570_v27 = vadd.f32 %v1569_v55, %v3549_v61 }
 0x27f   : > { %2778 = vst [vmem:[%s3570_s16 + $0x40] sm:$0xff] %v2574_v10  }
 0x282   : > { %v1391_v23 = vpop.f32.mrf.mxu3 }
 0x283   : > { %v1392_v33 = vadd.f32 %v1391_v23, %v3558_v7 }
 0x285   : > { %v1482_v25 = vpop.f32.mrf.mxu0  ;;  %v1571_v5 = vpop.f32.mrf.mxu1 }
 0x286   : > { %v1483_v28 = vadd.f32 %v1482_v25, %v3547_v60  ;;  %v1572_v30 = vadd.f32 %v1571_v5, %v3549_v61 }
 0x288   : > { %v2659_v31 = vpack.c.bf16 %v1483_v28, %v1481_v24  ;;  %v2739_v32 = vpack.c.bf16 %v1572_v30, %v1570_v27 }
 0x28a   : > { %2794 = vst [vmem:[%s3561_s11 + $0x48] sm:$0xff] %v2659_v31   ;;  %v1393_v26 = vpop.f32.mrf.mxu3 }
 0x28b   : > { %2809 = vst [vmem:[%s3566_s14 + $0x48] sm:$0xff] %v2739_v32   ;;  %v1394_v16 = vadd.f32 %v1393_v26, %v3558_v7 }
 0x28d   : > { %v2579_v35 = vpack.c.bf16 %v1394_v16, %v1392_v33  ;;  %v1485_v39 = vpop.f32.mrf.mxu0  ;;  %v1574_v36 = vpop.f32.mrf.mxu1 }
 0x28e   : > { %v1486_v48 = vadd.f32 %v1485_v39, %v3547_v60  ;;  %v1575_v46 = vadd.f32 %v1574_v36, %v3549_v61 }
 0x28f   : > { %2779 = vst [vmem:[%s3570_s16 + $0x48] sm:$0xff] %v2579_v35  }
 0x292   : > { %v1396_v41 = vpop.f32.mrf.mxu3 }
 0x293   : > { %v1397_v18 = vadd.f32 %v1396_v41, %v3558_v7 }
 0x295   : > { %v1487_v42 = vpop.f32.mrf.mxu0  ;;  %v1576_v43 = vpop.f32.mrf.mxu1 }
 0x296   : > { %v1488_v51 = vadd.f32 %v1487_v42, %v3547_v60  ;;  %v1577_v52 = vadd.f32 %v1576_v43, %v3549_v61 }
 0x298   : > { %v2664_v37 = vpack.c.bf16 %v1488_v51, %v1486_v48  ;;  %v2744_v40 = vpack.c.bf16 %v1577_v52, %v1575_v46 }
 0x29a   : > { %2795 = vst [vmem:[%s3561_s11 + $0x50] sm:$0xff] %v2664_v37   ;;  %v1398_v53 = vpop.f32.mrf.mxu3 }
 0x29b   : > { %2810 = vst [vmem:[%s3566_s14 + $0x50] sm:$0xff] %v2744_v40   ;;  %v1399_v50 = vadd.f32 %v1398_v53, %v3558_v7 }
 0x29d   : > { %v2584_v54 = vpack.c.bf16 %v1399_v50, %v1397_v18  ;;  %v1490_v57 = vpop.f32.mrf.mxu0  ;;  %v1579_v56 = vpop.f32.mrf.mxu1 }
 0x29e   : > { %v1491_v34 = vadd.f32 %v1490_v57, %v3547_v60  ;;  %v1580_v29 = vadd.f32 %v1579_v56, %v3549_v61 }
 0x29f   : > { %2780 = vst [vmem:[%s3570_s16 + $0x50] sm:$0xff] %v2584_v54  }
 0x2a2   : > { %v1401_v47 = vpop.f32.mrf.mxu3 }
 0x2a3   : > { %v1402_v59 = vadd.f32 %v1401_v47, %v3558_v7 }
 0x2a5   : > { %v1492_v44 = vpop.f32.mrf.mxu0  ;;  %v1581_v58 = vpop.f32.mrf.mxu1 }
 0x2a6   : > { %v1493_v45 = vadd.f32 %v1492_v44, %v3547_v60  ;;  %v1582_v63 = vadd.f32 %v1581_v58, %v3549_v61 }
 0x2a8   : > { %v2669_v2 = vpack.c.bf16 %v1493_v45, %v1491_v34  ;;  %v2749_v3 = vpack.c.bf16 %v1582_v63, %v1580_v29 }
 0x2aa   : > { %2796 = vst [vmem:[%s3561_s11 + $0x58] sm:$0xff] %v2669_v2   ;;  %v1403_v38 = vpop.f32.mrf.mxu3 }
 0x2ab   : > { %2811 = vst [vmem:[%s3566_s14 + $0x58] sm:$0xff] %v2749_v3   ;;  %v1404_v4 = vadd.f32 %v1403_v38, %v3558_v7 }
 0x2ad   : > { %v2589_v6 = vpack.c.bf16 %v1404_v4, %v1402_v59  ;;  %v1495_v0 = vpop.f32.mrf.mxu0  ;;  %v1584_v1 = vpop.f32.mrf.mxu1 }
 0x2ae   : > { %v1496_v20 = vadd.f32 %v1495_v0, %v3547_v60  ;;  %v1585_v9 = vadd.f32 %v1584_v1, %v3549_v61 }
 0x2af   : > { %2781 = vst [vmem:[%s3570_s16 + $0x58] sm:$0xff] %v2589_v6  }
 0x2b2   : > { %v1406_v8 = vpop.f32.mrf.mxu3 }
 0x2b3   : > { %v1407_v17 = vadd.f32 %v1406_v8, %v3558_v7 }
 0x2b5   : > { %v1497_v11 = vpop.f32.mrf.mxu0  ;;  %v1586_v62 = vpop.f32.mrf.mxu1 }
 0x2b6   : > { %v1498_v49 = vadd.f32 %v1497_v11, %v3547_v60  ;;  %v1587_v12 = vadd.f32 %v1586_v62, %v3549_v61 }
 0x2b8   : > { %v2674_v13 = vpack.c.bf16 %v1498_v49, %v1496_v20  ;;  %v2754_v14 = vpack.c.bf16 %v1587_v12, %v1585_v9 }
 0x2ba   : > { %2797 = vst [vmem:[%s3561_s11 + $0x60] sm:$0xff] %v2674_v13   ;;  %v1408_v15 = vpop.f32.mrf.mxu3 }
 0x2bb   : > { %2812 = vst [vmem:[%s3566_s14 + $0x60] sm:$0xff] %v2754_v14   ;;  %v1409_v19 = vadd.f32 %v1408_v15, %v3558_v7 }
 0x2bd   : > { %v2594_v22 = vpack.c.bf16 %v1409_v19, %v1407_v17  ;;  %v1500_v10 = vpop.f32.mrf.mxu0  ;;  %v1589_v21 = vpop.f32.mrf.mxu1 }
 0x2be   : > { %v1501_v5 = vadd.f32 %v1500_v10, %v3547_v60  ;;  %v1590_v24 = vadd.f32 %v1589_v21, %v3549_v61 }
 0x2bf   : > { %2782 = vst [vmem:[%s3570_s16 + $0x60] sm:$0xff] %v2594_v22  }
 0x2c2   : > { %v1411_v55 = vpop.f32.mrf.mxu3 }
 0x2c3   : > { %v1412_v26 = vadd.f32 %v1411_v55, %v3558_v7 }
 0x2c5   : > { %v1502_v23 = vpop.f32.mrf.mxu0  ;;  %v1591_v25 = vpop.f32.mrf.mxu1 }
 0x2c6   : > { %v1503_v27 = vadd.f32 %v1502_v23, %v3547_v60  ;;  %v1592_v28 = vadd.f32 %v1591_v25, %v3549_v61 }
 0x2c8   : > { %v2679_v30 = vpack.c.bf16 %v1503_v27, %v1501_v5  ;;  %v2759_v31 = vpack.c.bf16 %v1592_v28, %v1590_v24 }
 0x2ca   : > { %2798 = vst [vmem:[%s3561_s11 + $0x68] sm:$0xff] %v2679_v30   ;;  %v1413_v32 = vpop.f32.mrf.mxu3 }
 0x2cb   : > { %2813 = vst [vmem:[%s3566_s14 + $0x68] sm:$0xff] %v2759_v31   ;;  %v1414_v33 = vadd.f32 %v1413_v32, %v3558_v7 }
 0x2cd   : > { %v2599_v16 = vpack.c.bf16 %v1414_v33, %v1412_v26  ;;  %v1505_v35 = vpop.f32.mrf.mxu0  ;;  %v1594_v39 = vpop.f32.mrf.mxu1 }
 0x2ce   : > { %v1506_v43 = vadd.f32 %v1505_v35, %v3547_v60  ;;  %v1595_v48 = vadd.f32 %v1594_v39, %v3549_v61 }
 0x2cf   : > { %2783 = vst [vmem:[%s3570_s16 + $0x68] sm:$0xff] %v2599_v16  }
 0x2d2   : > { %v1416_v36 = vpop.f32.mrf.mxu3 }
 0x2d3   : > { %v1417_v53 = vadd.f32 %v1416_v36, %v3558_v7 }
 0x2d5   : > { %v1507_v41 = vpop.f32.mrf.mxu0  ;;  %v1596_v42 = vpop.f32.mrf.mxu1 }
 0x2d6   : > { %v1508_v46 = vadd.f32 %v1507_v41, %v3547_v60  ;;  %v1597_v51 = vadd.f32 %v1596_v42, %v3549_v61 }
 0x2d8   : > { %v2684_v52 = vpack.c.bf16 %v1508_v46, %v1506_v43  ;;  %v2764_v37 = vpack.c.bf16 %v1597_v51, %v1595_v48 }
 0x2da   : > { %2799 = vst [vmem:[%s3561_s11 + $0x70] sm:$0xff] %v2684_v52   ;;  %v1418_v40 = vpop.f32.mrf.mxu3 }
 0x2db   : > { %2814 = vst [vmem:[%s3566_s14 + $0x70] sm:$0xff] %v2764_v37   ;;  %v1419_v18 = vadd.f32 %v1418_v40, %v3558_v7 }
 0x2dd   : > { %v2604_v50 = vpack.c.bf16 %v1419_v18, %v1417_v53  ;;  %v1510_v54 = vpop.f32.mrf.mxu0  ;;  %v1599_v57 = vpop.f32.mrf.mxu1 }
 0x2de   : > { %v1511_v58 = vadd.f32 %v1510_v54, %v3547_v60  ;;  %v1600_v34 = vadd.f32 %v1599_v57, %v3549_v61 }
 0x2df   : > { %2784 = vst [vmem:[%s3570_s16 + $0x70] sm:$0xff] %v2604_v50  }
 0x2e2   : > { %v1421_v56 = vpop.f32.mrf.mxu3 }
 0x2e5   : > { %v1512_v47 = vpop.f32.mrf.mxu0  ;;  %v1601_v44 = vpop.f32.mrf.mxu1 }
 0x2e6   : > { %v1513_v29 = vadd.f32 %v1512_v47, %v3547_v60  ;;  %v1602_v45 = vadd.f32 %v1601_v44, %v3549_v61  ;;  %v1422_v61 = vadd.f32 %v1421_v56, %v3558_v7 }
 0x2e8   : > { %v2689_v63 = vpack.c.bf16 %v1513_v29, %v1511_v58  ;;  %v2769_v2 = vpack.c.bf16 %v1602_v45, %v1600_v34 }
 0x2ea   : > { %2800 = vst [vmem:[%s3561_s11 + $0x78] sm:$0xff] %v2689_v63   ;;  %v1423_v60 = vpop.f32.mrf.mxu3 }
 0x2eb   : > { %2815 = vst [vmem:[%s3566_s14 + $0x78] sm:$0xff] %v2769_v2   ;;  %v1424_v3 = vadd.f32 %v1423_v60, %v3558_v7  ;;  %s3070_s14 = scalar_lea.hbm %s3846_s6, 256 }
 0x2ec   : > { %p3072_p9 = scmp.lt.s32.totalorder %s3070_s14, %s3066_s1 }
 0x2ee   : > { %p3073_p2 = por %p3072_p9, %p3071_p11 }
 0x2f0   : > { %p3074_p10 = pnand %p3073_p2, %p3069_p8 }
 0x2f2   : > { %3077 = shalt.err (!%p3074_p10)
}
 0x2f3   : > { %s3193_s28 = smov 64   ;;  %s3194_s20 = smov 4   ;;  %v2609_v7 = vpack.c.bf16 %v1424_v3, %v1422_v61 }
 0x2f4   : > { %2850 = dma.vmem_to_hbm [thread:$0]  (%p3323_p7), %s3737_s15, 2048, %s1839_s12, %s3760_s10, %s3193_s28, %s3193_s28, %s3194_s20  }
 0x2f5   : > { %s3092_s2 = sshra.s32 %s1856_s22, 4  ;;  %s3098_s14 = scalar_lea.hbm %s3847_s7, 256  ;;  %s3093_s2 = int_to_ptr.hbm [resolvable:$true] %s3092_s2 }
 0x2f6   : > { %s3094_s1 = scalar_lea.hbm %s3093_s2, 128  ;;  %p3099_p3 = scmp.lt.s32.totalorder %s3093_s2, %s3847_s7 }
 0x2f7   : > { %p3095_p12 = scmp.ne.s32.totalorder %s3093_s2, %s3094_s1  ;;  %p3100_p5 = scmp.lt.s32.totalorder %s3098_s14, %s3094_s1 }
 0x2f9   : > { %p3096_p13 = pnand %p3095_p12, %p3323_p7  ;;  %p3101_p1 = por %p3100_p5, %p3099_p3 }
 0x2fb   : > { %p3097_p0 = pneg %p3096_p13 }
 0x2fd   : > { %p3102_p4 = pnand %p3101_p1, %p3097_p0 }
 0x2ff   : > { %3105 = shalt.err (!%p3102_p4)
}
 0x300   : > { %2851 = dma.vmem_to_hbm [thread:$0]  (%p3323_p7), %s3750_s9, 2048, %s1856_s22, %s3760_s10, %s3193_s28, %s3193_s28, %s3194_s20  }
 0x301   : > { %2785 = vst [vmem:[%s3570_s16 + $0x78] sm:$0xff] %v2609_v7   ;;  %s1797_s15 = scalar_lea.sflag [#allocation4], %s3352_s13  ;;  %s3120_s12 = sshra.s32 %s1822_s23, 4  ;;  %s3121_s12 = int_to_ptr.hbm [resolvable:$true] %s3120_s12 }
 0x302   : > { %s3122_s2 = scalar_lea.hbm %s3121_s12, 128  ;;  %s3126_s3 = scalar_lea.hbm %s3845_s5, 256 }
 0x303   : > { %p3123_p8 = scmp.ne.s32.totalorder %s3121_s12, %s3122_s2  ;;  %p3127_p2 = scmp.lt.s32.totalorder %s3121_s12, %s3845_s5 }
 0x304   : > { %p3128_p10 = scmp.lt.s32.totalorder %s3126_s3, %s3122_s2 }
 0x305   : > { %p3124_p11 = pnand %p3123_p8, %p3323_p7 }
 0x306   : > { %p3129_p12 = por %p3128_p10, %p3127_p2 }
 0x307   : > { %p3125_p9 = pneg %p3124_p11 }
 0x309   : > { %p3130_p13 = pnand %p3129_p12, %p3125_p9 }
 0x30b   : > { %3133 = shalt.err (!%p3130_p13)
}
 0x30c   : > { %2849 = dma.vmem_to_hbm [thread:$0]  (%p3323_p7), %s3755_s19, 2048, %s1822_s23, %s1797_s15, %s3193_s28, %s3193_s28, %s3194_s20  }
 0x30d PF: > { %s1870_s13 = sand.u32 1, %s3172_s24   ;;  %p3865_p0 = scmp.ge.s32.totalorder %s3184_s27, 2 }
 0x30e   : > { %s1871_s16 = scalar_lea.sflag [#allocation4], %s1870_s13 }
 0x30f   : > { %p2870_p3 = pnand %p3865_p0, %p3272_p6 }
 0x311   : > { %p2871_p5 = pneg %p2870_p3 }
 0x313   : > { %3163 = dma.done.wait (%p2871_p5), %s1871_s16, 2048  }
 0x314   : > { %3165 = vsyncadd (%p2871_p5), %s1871_s16, 4294965248  ;;  %s3866_s21 = sadd.s32 4294967294, %s3184_s27  }
 0x315   : > { %s1880_s22 = sand.u32 1, %s3866_s21  }
 0x316   : > { %s1881_s9 = scalar_lea.sflag [#allocation12], %s1880_s22 }
 0x317   : > { %3167 = dma.done.wait (%p2871_p5), %s1881_s9, 4096  }
 0x318   : > { %3169 = vsyncadd (%p2871_p5), %s1881_s9, 4294963200  ;;  %p26_p7 = scmp.ge.s32.totalorder %s3309_s17, 4   ;;  %s3867_s24 = smov %s3176_s25 }
 0x319   : > { %s3868_s25 = smov %s3180_s26  ;;  %s3869_s26 = smov %s3319_s18 }
 0x31a   : > { %s3870_s27 = smov %s3309_s17  ;;  %28 = sbr.rel (!%p26_p7) target bundleno = 13 (0xd), region = 129 }
 0x31f   :  { %1897 = vsyncpa [#allocation3], 1 }
 0x320   :  { %1899 = vsyncpa [#allocation3 + $0x1], 1 }
 0x321   :  { %1900 = vsyncpa [#allocation6], 1 }
 0x322   :  { %1901 = vsyncpa [#allocation9], 1 }
 0x323   :  { %1902 = vsyncpa [#allocation4], 1 }
 0x324   :  { %1904 = vsyncpa [#allocation4 + $0x1], 1 }
 0x325   :  { %1905 = vsyncpa [#allocation12], 1 }
 0x326   :  { %1907 = vsyncpa [#allocation12 + $0x1], 1 }

</bundles_post_ra>
